<compile_context>
chip_gen: v7x
topology: tpu7x:2x2x1
jax: 0.10.0
libtpu: 0.0.40
codegen_flags: <defaults>
</compile_context>

<pallas_src>
import functools

import jax
import jax.numpy as jnp
from jax import lax
from jax.experimental import pallas as pl
from jax.experimental.pallas import tpu as pltpu

LN_EPS = 1e-12            # BERT-style LayerNorm eps (note: below f32 resolution, matches ref)
MASK_FILL = -10000.0
VMEM_LIMIT_BYTES = 48 * 1024 * 1024   # above 16/32 MiB defaults, below every chip's physical VMEM


def _round_up(n, m):
    return ((n + m - 1) // m) * m


def _gelu(x):
    c = 0.7978845608028654  # sqrt(2/pi)
    return 0.5 * x * (1.0 + jnp.tanh(c * (x + 0.044715 * x * x * x)))


def _layer_norm(x, gamma, beta, eps):
    mean = jnp.mean(x, axis=-1, keepdims=True)
    cent = x - mean
    var = jnp.mean(cent * cent, axis=-1, keepdims=True)
    return cent * lax.rsqrt(var + eps) * gamma + beta


# ---------------------------------------------------------------------------
# Probe: does this build support single-buffered (Buffered(1)) operands?
# Weights are grid-invariant (per modality), so single-buffering them halves
# their VMEM footprint at zero cost.  Fall back to default double-buffering.
# ---------------------------------------------------------------------------
def _probe_single_buffer_weights():
    if not hasattr(pl, "Buffered"):
        return None
    try:
        mode = pl.Buffered(buffer_count=1)

        def k(x_ref, w_ref, o_ref):
            o_ref[...] = x_ref[...] + w_ref[...]

        x = jnp.arange(16 * 128, dtype=jnp.float32).reshape(16, 128)
        w = jnp.ones((16, 128), jnp.float32)
        out = pl.pallas_call(
            k,
            out_shape=jax.ShapeDtypeStruct((16, 128), jnp.float32),
            grid=(2,),
            in_specs=[pl.BlockSpec((8, 128), lambda i: (i, 0)),
                      pl.BlockSpec((8, 128), lambda i: (i, 0), pipeline_mode=mode)],
            out_specs=pl.BlockSpec((8, 128), lambda i: (i, 0)),
        )(x, w)
        if bool(jnp.allclose(jax.block_until_ready(out), x + w)):
            return mode
    except Exception:
        pass
    return None


_WEIGHT_PIPELINE_MODE = _probe_single_buffer_weights()


def _const_spec_1d(shape):
    """Grid-invariant operand spec for 1-D grids (single-buffered when supported)."""
    kwargs = {}
    if _WEIGHT_PIPELINE_MODE is not None:
        kwargs["pipeline_mode"] = _WEIGHT_PIPELINE_MODE
    return pl.BlockSpec(shape, lambda i: (0,) * len(shape), **kwargs)


# ---------------------------------------------------------------------------
# Kernel 1: row-tiled linear  y = x @ W + b   (v2t_project).  W is bf16.
# ---------------------------------------------------------------------------
def _linear_kernel(x_ref, w_ref, b_ref, o_ref):
    x = x_ref[...].astype(jnp.bfloat16)
    y = jnp.dot(x, w_ref[...], preferred_element_type=jnp.float32) + b_ref[...]
    o_ref[...] = y.astype(o_ref.dtype)


def _linear(x2d, w, b, *, max_rows=512):
    n, d_in = x2d.shape
    d_out = w.shape[1]
    tm = min(max_rows, _round_up(n, 8))
    n_pad = _round_up(n, tm)
    if n_pad != n:
        x2d = jnp.pad(x2d, ((0, n_pad - n), (0, 0)))
    out = pl.pallas_call(
        _linear_kernel,
        out_shape=jax.ShapeDtypeStruct((n_pad, d_out), x2d.dtype),
        grid_spec=pltpu.PrefetchScalarGridSpec(
            num_scalar_prefetch=0,
            grid=(n_pad // tm,),
            in_specs=[pl.BlockSpec((tm, d_in), lambda i: (i, 0)),
                      _const_spec_1d((d_in, d_out)),
                      _const_spec_1d((1, d_out))],
            out_specs=pl.BlockSpec((tm, d_out), lambda i: (i, 0)),
        ),
        compiler_params=pltpu.CompilerParams(
            dimension_semantics=("parallel",),
            vmem_limit_bytes=VMEM_LIMIT_BYTES),
    )(x2d, w, b)
    return out[:n]


# ---------------------------------------------------------------------------
# Kernel 2: one fused BERT cross-attention layer for BOTH modalities.
#   grid = (modality, batch-tile); weights stacked over modality on axis 0.
# ---------------------------------------------------------------------------
def _cross_layer_kernel(x_ref, s_ref, m_ref,
                        wq_ref, bq_ref, wkv_ref, bkv_ref,
                        wo_ref, bo_ref, ln1_ref,
                        wi_ref, bi_ref, wo2_ref, bo2_ref, ln2_ref,
                        o_ref, ctx_ref, *, num_heads, batch_tile):
    f32 = jnp.float32
    bf16 = jnp.bfloat16
    d = x_ref.shape[-1]
    dh = d // num_heads
    scale = 1.0 / (dh ** 0.5)

    # Resident bf16 weights / f32 bias+LN for this modality (hoisted out of the batch loop).
    wq, wkv, wo = wq_ref[...], wkv_ref[...], wo_ref[...]
    wi, wo2 = wi_ref[...], wo2_ref[...]
    bq, bkv, bo = bq_ref[...], bkv_ref[...], bo_ref[...]
    bi, bo2 = bi_ref[...], bo2_ref[...]
    ln1, ln2 = ln1_ref[...], ln2_ref[...]

    def sample(b, carry):
        x = x_ref[b].astype(f32)          # (Sq, D) residual stream kept in f32
        s_bf = s_ref[b].astype(bf16)      # (Sk, D) bf16 MXU operand
        bias = m_ref[b].astype(f32)       # (1, Sk) additive attention bias

        q = jnp.dot(x.astype(bf16), wq, preferred_element_type=f32) + bq
        kv = jnp.dot(s_bf, wkv, preferred_element_type=f32) + bkv       # fused K|V
        k = kv[:, :d]
        v = kv[:, d:]

        # Heads: static unroll; contexts written into static column slices of VMEM
        # scratch (no lane-axis concatenate); QK^T via dot_general (no .T materialized).
        for h in range(num_heads):
            sl = slice(h * dh, (h + 1) * dh)
            qh = q[:, sl].astype(bf16)
            kh = k[:, sl].astype(bf16)
            vh = v[:, sl].astype(bf16)
            sc = lax.dot_general(qh, kh, (((1,), (1,)), ((), ())),
                                 preferred_element_type=f32) * scale + bias
            sc = sc - jnp.max(sc, axis=-1, keepdims=True)
            p = jnp.exp(sc)
            p = p * pl.reciprocal(jnp.sum(p, axis=-1, keepdims=True), approx=True)
            ctx_ref[:, sl] = jnp.dot(p.astype(bf16), vh, preferred_element_type=f32)

        attn = jnp.dot(ctx_ref[...].astype(bf16), wo, preferred_element_type=f32) + bo
        h1 = _layer_norm(attn + x, ln1[0:1, :], ln1[1:2, :], LN_EPS)
        inter = _gelu(jnp.dot(h1.astype(bf16), wi, preferred_element_type=f32) + bi)
        ffn = jnp.dot(inter.astype(bf16), wo2, preferred_element_type=f32) + bo2
        out = _layer_norm(ffn + h1, ln2[0:1, :], ln2[1:2, :], LN_EPS)
        o_ref[b] = out.astype(o_ref.dtype)
        return carry

    lax.fori_loop(0, batch_tile, sample, 0, unroll=True)


def _cross_layer(x, srcs, biases, lp, *, num_heads, max_batch_tile=8):
    # x:      (G, B, Sq, D)   per-modality query hidden states
    # srcs:   (G, B, Sk, D)   stacked key/value sources
    # biases: (G, B, 1, Sk)   additive attention biases
    g, bsz, s_q, d = x.shape
    s_k = srcs.shape[2]
    d_i = lp["W_i"].shape[-1]

    bt = min(max_batch_tile, bsz)
    bsz_pad = _round_up(bsz, bt)
    if bsz_pad != bsz:
        pad = bsz_pad - bsz
        x = jnp.pad(x, ((0, 0), (0, pad), (0, 0), (0, 0)))
        srcs = jnp.pad(srcs, ((0, 0), (0, pad), (0, 0), (0, 0)))
        biases = jnp.pad(biases, ((0, 0), (0, pad), (0, 0), (0, 0)),
                         constant_values=MASK_FILL)

    def wspec(*shape):
        kwargs = {}
        if _WEIGHT_PIPELINE_MODE is not None:
            kwargs["pipeline_mode"] = _WEIGHT_PIPELINE_MODE
        return pl.BlockSpec((None,) + shape,
                            lambda m, b: (m,) + (0,) * len(shape), **kwargs)

    kernel = functools.partial(_cross_layer_kernel, num_heads=num_heads, batch_tile=bt)
    out = pl.pallas_call(
        kernel,
        out_shape=jax.ShapeDtypeStruct((g, bsz_pad, s_q, d), x.dtype),
        grid_spec=pltpu.PrefetchScalarGridSpec(
            num_scalar_prefetch=0,
            grid=(g, bsz_pad // bt),
            in_specs=[
                pl.BlockSpec((None, bt, s_q, d), lambda m, b: (m, b, 0, 0)),   # queries
                pl.BlockSpec((None, bt, s_k, d), lambda m, b: (m, b, 0, 0)),   # key/value source
                pl.BlockSpec((None, bt, 1, s_k), lambda m, b: (m, b, 0, 0)),   # additive mask
                wspec(d, d), wspec(1, d),                                      # W_q, b_q
                wspec(d, 2 * d), wspec(1, 2 * d),                              # W_kv, b_kv
                wspec(d, d), wspec(1, d),                                      # W_o, b_o
                wspec(2, d),                                                   # ln1 (gamma;beta)
                wspec(d, d_i), wspec(1, d_i),                                  # W_i, b_i
                wspec(d_i, d), wspec(1, d),                                    # W_o2, b_o2
                wspec(2, d),                                                   # ln2 (gamma;beta)
            ],
            out_specs=pl.BlockSpec((None, bt, s_q, d), lambda m, b: (m, b, 0, 0)),
            scratch_shapes=[pltpu.VMEM((s_q, d), jnp.float32)],                # per-sample ctx
        ),
        compiler_params=pltpu.CompilerParams(
            dimension_semantics=("parallel", "parallel"),
            vmem_limit_bytes=VMEM_LIMIT_BYTES),
    )(x, srcs, biases,
      lp["W_q"], lp["b_q"], lp["W_kv"], lp["b_kv"],
      lp["W_o"], lp["b_o"], lp["ln1"],
      lp["W_i"], lp["b_i"], lp["W_o2"], lp["b_o2"], lp["ln2"])
    return out[:, :bsz]


# ---------------------------------------------------------------------------
# Kernel 3: fused mlp_project  out = GELU([a | t | v] @ W_mlp + b_mlp)
#   D <= 128: pack into one (tm, 3D) bf16 scratch -> single K=3D matmul
#   D  > 128: concat-free 3-way split matmul
# ---------------------------------------------------------------------------
def _mlp_kernel_concat(a_ref, t_ref, v_ref, w_ref, b_ref, o_ref, cat_ref, *, d):
    cat_ref[:, 0:d] = a_ref[...].astype(cat_ref.dtype)
    cat_ref[:, d:2 * d] = t_ref[...].astype(cat_ref.dtype)
    cat_ref[:, 2 * d:3 * d] = v_ref[...].astype(cat_ref.dtype)
    y = jnp.dot(cat_ref[...], w_ref[...], preferred_element_type=jnp.float32) + b_ref[...]
    o_ref[...] = _gelu(y).astype(o_ref.dtype)


def _mlp_kernel_split(a_ref, t_ref, v_ref, w_ref, b_ref, o_ref, *, d):
    bf16 = jnp.bfloat16
    y = (jnp.dot(a_ref[...].astype(bf16), w_ref[0:d, :], preferred_element_type=jnp.float32)
         + jnp.dot(t_ref[...].astype(bf16), w_ref[d:2 * d, :], preferred_element_type=jnp.float32)
         + jnp.dot(v_ref[...].astype(bf16), w_ref[2 * d:3 * d, :], preferred_element_type=jnp.float32)
         + b_ref[...])
    o_ref[...] = _gelu(y).astype(o_ref.dtype)


def _mlp_project(a2t, t, v2t, w, b, *, max_rows=512):
    n, d = t.shape
    tm = min(max_rows, _round_up(n, 8))
    n_pad = _round_up(n, tm)
    pad = n_pad - n
    if pad:
        a2t = jnp.pad(a2t, ((0, pad), (0, 0)))
        t = jnp.pad(t, ((0, pad), (0, 0)))
        v2t = jnp.pad(v2t, ((0, pad), (0, 0)))
    if d <= 128:
        kernel = functools.partial(_mlp_kernel_concat, d=d)
        scratch = [pltpu.VMEM((tm, 3 * d), jnp.bfloat16)]
    else:
        kernel = functools.partial(_mlp_kernel_split, d=d)
        scratch = []
    row_spec = pl.BlockSpec((tm, d), lambda i: (i, 0))
    out = pl.pallas_call(
        kernel,
        out_shape=jax.ShapeDtypeStruct((n_pad, d), t.dtype),
        grid_spec=pltpu.PrefetchScalarGridSpec(
            num_scalar_prefetch=0,
            grid=(n_pad // tm,),
            in_specs=[row_spec, row_spec, row_spec,
                      _const_spec_1d((3 * d, d)),
                      _const_spec_1d((1, d))],
            out_specs=row_spec,
            scratch_shapes=scratch,
        ),
        compiler_params=pltpu.CompilerParams(
            dimension_semantics=("parallel",),
            vmem_limit_bytes=VMEM_LIMIT_BYTES),
    )(a2t, t, v2t, w, b)
    return out[:n]


# ---------------------------------------------------------------------------
# Full SDIF forward (shallow_seq)
# ---------------------------------------------------------------------------
@functools.partial(jax.jit, static_argnames=("num_heads",))
def sdif_forward(text_feats, video_feats, audio_feats, text_mask, params, num_heads=4):
    del text_mask  # only feeds the *_rep pooled tensors, which are not returned
    bsz, s_q, d = text_feats.shape
    assert d % num_heads == 0, "dst_feature_dims must be divisible by cross_num_heads"
    d_v = video_feats.shape[-1]
    d_a = audio_feats.shape[-1]
    f32 = jnp.float32

    # v2t_project (Pallas row-tiled linear)
    video_seq = _linear(video_feats.reshape(-1, d_v),
                        params["W_v2t"], params["b_v2t"]).reshape(bsz, -1, d)

    # modality masks -> additive attention biases (tiny O(B*S*D) preprocessing)
    video_mask = jnp.sum((video_feats != 0).astype(f32), axis=-1) / d_v
    audio_mask = jnp.sum((audio_feats != 0).astype(f32), axis=-1) / d_a
    video_bias = ((1.0 - video_mask) * MASK_FILL)[:, None, :]
    audio_bias = ((1.0 - audio_mask) * MASK_FILL)[:, None, :]

    # Stack [video, audio] along a leading modality axis (pad keys to common length;
    # padded keys carry bias = MASK_FILL so they contribute exactly zero attention).
    s_v, s_a = video_seq.shape[1], audio_feats.shape[1]
    s_k = max(s_v, s_a)

    def pad_src(z):
        p = s_k - z.shape[1]
        return jnp.pad(z, ((0, 0), (0, p), (0, 0))) if p else z

    def pad_bias(z):
        p = s_k - z.shape[-1]
        return jnp.pad(z, ((0, 0), (0, 0), (0, p)), constant_values=MASK_FILL) if p else z

    srcs = jnp.stack([pad_src(video_seq),
                      pad_src(audio_feats.astype(text_feats.dtype))], axis=0)
    biases = jnp.stack([pad_bias(video_bias), pad_bias(audio_bias)], axis=0).astype(f32)

    # Both cross encoders run in one pallas_call per depth (modality grid axis).
    x = jnp.broadcast_to(text_feats[None], (2, bsz, s_q, d))
    for lp in params["cross"]:
        x = _cross_layer(x, srcs, biases, lp, num_heads=num_heads)
    video2text, audio2text = x[0], x[1]

    shallow = _mlp_project(audio2text.reshape(-1, d), text_feats.reshape(-1, d),
                           video2text.reshape(-1, d),
                           params["W_mlp"], params["b_mlp"])
    return shallow.reshape(bsz, s_q, d)


# ---------------------------------------------------------------------------
# Pure-JAX reference (mirrors the PyTorch forward, eval mode).  It uses the
# same bf16 MXU-operand / f32-accumulation convention as the kernels so the
# comparison isolates kernel correctness, not bf16 quantization.
# ---------------------------------------------------------------------------
def _mm(x, w_bf16, b_f32):
    return jnp.dot(x.astype(jnp.bfloat16), w_bf16,
                   preferred_element_type=jnp.float32) + b_f32


def _ln_ref(x, gamma, beta):
    mean = x.mean(-1, keepdims=True)
    var = ((x - mean) ** 2).mean(-1, keepdims=True)
    return (x - mean) * lax.rsqrt(var + LN_EPS) * gamma + beta


def reference_forward(text_feats, video_feats, audio_feats, text_mask, params, num_heads):
    del text_mask
    f32 = jnp.float32
    bf16 = jnp.bfloat16
    t = text_feats.astype(f32)
    vf = video_feats.astype(f32)
    af = audio_feats.astype(f32)
    d = t.shape[-1]

    video_seq = _mm(vf, params["W_v2t"], params["b_v2t"])
    video_mask = jnp.sum((vf != 0).astype(f32), -1) / vf.shape[-1]
    audio_mask = jnp.sum((af != 0).astype(f32), -1) / af.shape[-1]
    vb = ((1.0 - video_mask) * MASK_FILL)[:, None, :]
    ab = ((1.0 - audio_mask) * MASK_FILL)[:, None, :]

    def cross_layer(x, src, bias, lp, m):
        b, s_q, _ = x.shape
        s_k = src.shape[1]
        h = num_heads
        dh = d // h
        q = _mm(x, lp["W_q"][m], lp["b_q"][m])
        kv = _mm(src, lp["W_kv"][m], lp["b_kv"][m])
        k, v = kv[..., :d], kv[..., d:]
        qh = q.reshape(b, s_q, h, dh).transpose(0, 2, 1, 3).astype(bf16)
        kh = k.reshape(b, s_k, h, dh).transpose(0, 2, 1, 3).astype(bf16)
        vh = v.reshape(b, s_k, h, dh).transpose(0, 2, 1, 3).astype(bf16)
        sc = jnp.einsum('bhqd,bhkd->bhqk', qh, kh,
                        preferred_element_type=f32) / (dh ** 0.5)
        sc = sc + bias[:, :, None, :]
        p = jax.nn.softmax(sc, axis=-1)
        ctx = jnp.einsum('bhqk,bhkd->bhqd', p.astype(bf16), vh,
                         preferred_element_type=f32)
        ctx = ctx.transpose(0, 2, 1, 3).reshape(b, s_q, d)
        attn = _mm(ctx, lp["W_o"][m], lp["b_o"][m])
        h1 = _ln_ref(attn + x, lp["ln1"][m, 0], lp["ln1"][m, 1])
        inter = _gelu(_mm(h1, lp["W_i"][m], lp["b_i"][m]))
        ffn = _mm(inter, lp["W_o2"][m], lp["b_o2"][m])
        return _ln_ref(ffn + h1, lp["ln2"][m, 0], lp["ln2"][m, 1])

    v2t = t
    for lp in params["cross"]:
        v2t = cross_layer(v2t, video_seq, vb, lp, m=0)
    a2t = t
    for lp in params["cross"]:
        a2t = cross_layer(a2t, af, ab, lp, m=1)

    cat = jnp.concatenate([a2t, t, v2t], axis=-1)
    return _gelu(_mm(cat, params["W_mlp"], params["b_mlp"]))


# ---------------------------------------------------------------------------
# Params: matmul weights stored bf16 (halved VMEM footprint, bf16 MXU passes);
# biases / LayerNorm in f32.  Per-depth weights are stacked [video, audio].
# ---------------------------------------------------------------------------
def init_params(key, text_dim, video_dim, inter_dim, n_layers_cross):
    d = text_dim
    bf16 = jnp.bfloat16

    def lin(k, fan_in, fan_out):
        kw, kb = jax.random.split(k)
        bound = 1.0 / jnp.sqrt(fan_in)
        w = jax.random.uniform(kw, (fan_in, fan_out), jnp.float32, -bound, bound)
        b = jax.random.uniform(kb, (1, fan_out), jnp.float32, -bound, bound)
        return w, b

    keys = jax.random.split(key, 2 + 2 * n_layers_cross)
    w_v2t, b_v2t = lin(keys[0], video_dim, d)
    w_mlp, b_mlp = lin(keys[1], 3 * d, d)

    def cross_layer_params(k):
        ks = jax.random.split(k, 5)
        w_q, b_q = lin(ks[0], d, d)
        w_kv, b_kv = lin(ks[1], d, 2 * d)
        w_o, b_o = lin(ks[2], d, d)
        w_i, b_i = lin(ks[3], d, inter_dim)
        w_o2, b_o2 = lin(ks[4], inter_dim, d)
        ln = jnp.concatenate([jnp.ones((1, d), jnp.float32),
                              jnp.zeros((1, d), jnp.float32)], axis=0)
        return {"W_q": w_q, "b_q": b_q, "W_kv": w_kv, "b_kv": b_kv,
                "W_o": w_o, "b_o": b_o, "ln1": ln,
                "W_i": w_i, "b_i": b_i, "W_o2": w_o2, "b_o2": b_o2, "ln2": ln}

    v_layers = [cross_layer_params(keys[2 + i]) for i in range(n_layers_cross)]
    a_layers = [cross_layer_params(keys[2 + n_layers_cross + i])
                for i in range(n_layers_cross)]

    def stack_layer(vl, al):
        out = {}
        for name in vl:
            s = jnp.stack([vl[name], al[name]], axis=0)     # axis 0: [video, audio]
            out[name] = s.astype(bf16) if name.startswith("W_") else s
        return out

    cross = [stack_layer(v_layers[i], a_layers[i]) for i in range(n_layers_cross)]
    return {"W_v2t": w_v2t.astype(bf16), "b_v2t": b_v2t,
            "W_mlp": w_mlp.astype(bf16), "b_mlp": b_mlp,
            "cross": cross}


if __name__ == "__main__":
    B, S = 2, 8
    DST_DIM = TEXT_DIM = AUDIO_DIM = 32   # audio feeds cross-attn directly -> equals dst dim
    VIDEO_DIM = 20
    N_HEADS = 4
    N_LAYERS_CROSS = 2
    INTER_DIM = 4 * DST_DIM

    key = jax.random.PRNGKey(0)
    k_t, k_v, k_a, k_m, k_p = jax.random.split(key, 5)
    text_feats = jax.random.normal(k_t, (B, S, TEXT_DIM), jnp.float32)
    video_feats = jax.random.normal(k_v, (B, S, VIDEO_DIM), jnp.float32)
    audio_feats = jax.random.normal(k_a, (B, S, AUDIO_DIM), jnp.float32)
    # zero-padded tail frames -> exercises the ne(0)-based modality masks
    video_feats = video_feats.at[0, -2:, :].set(0.0)
    audio_feats = audio_feats.at[1, -3:, :].set(0.0)
    text_mask = (jax.random.uniform(k_m, (B, S)) > 0.1).astype(jnp.float32)

    params = init_params(k_p, TEXT_DIM, VIDEO_DIM, INTER_DIM, N_LAYERS_CROSS)

    out = sdif_forward(text_feats, video_feats, audio_feats, text_mask, params,
                       num_heads=N_HEADS)
    out = jax.block_until_ready(out)

    ref = reference_forward(text_feats, video_feats, audio_feats, text_mask, params, N_HEADS)
    assert out.shape == (B, S, DST_DIM)
    # tolerance covers the approx-reciprocal softmax and MXU accumulation-order deltas
    assert jnp.allclose(out, ref, atol=1e-2, rtol=1e-2), "mismatch vs JAX reference"

    print("KERNEL_OK")
</pallas_src>

<mosaic_0001>
module attributes {stable_mosaic.version = 11 : i64} {
  func.func @k(%arg0: i32, %arg1: memref<8x128xf32, #tpu.memory_space<vmem>>, %arg2: memref<8x128xf32, #tpu.memory_space<vmem>>, %arg3: memref<8x128xf32, #tpu.memory_space<vmem>>) attributes {dimension_semantics = [#tpu.dimension_semantics<arbitrary>], iteration_bounds = array<i64: 2>, scalar_prefetch = 0 : i64, scratch_operands = 0 : i64, tpu.core_type = #tpu.core_type<tc>, window_params = [{transform_indices = @transform_0, window_bounds = array<i64: 8, 128>}, {pipeline_mode = #tpu.pipeline_mode<synchronous>, transform_indices = @transform_1, window_bounds = array<i64: 8, 128>}, {transform_indices = @transform_2, window_bounds = array<i64: 8, 128>}]} {
    %c0 = arith.constant 0 : index
    %c0_0 = arith.constant 0 : index
    %0 = vector.load %arg1[%c0, %c0_0] : memref<8x128xf32, #tpu.memory_space<vmem>>, vector<8x128xf32>
    %c0_1 = arith.constant 0 : index
    %c0_2 = arith.constant 0 : index
    %1 = vector.load %arg2[%c0_1, %c0_2] : memref<8x128xf32, #tpu.memory_space<vmem>>, vector<8x128xf32>
    %2 = arith.addf %0, %1 : vector<8x128xf32>
    %c0_3 = arith.constant 0 : index
    %c0_4 = arith.constant 0 : index
    %3 = vector.load %arg3[%c0_3, %c0_4] : memref<8x128xf32, #tpu.memory_space<vmem>>, vector<8x128xf32>
    tpu.vector_store %arg3[%c0_3, %c0_4], %2 {strides = array<i32>} : memref<8x128xf32, #tpu.memory_space<vmem>>, vector<8x128xf32>,
    return
  }
  func.func @transform_0(%arg0: i32) -> (i32, i32) {
    %c0_i32 = arith.constant 0 : i32
    %c0_i32_0 = arith.constant 0 : i32
    return %arg0, %c0_i32 : i32, i32
  }
  func.func @transform_1(%arg0: i32) -> (i32, i32) {
    %c0_i32 = arith.constant 0 : i32
    %c0_i32_0 = arith.constant 0 : i32
    return %arg0, %c0_i32 : i32, i32
  }
  func.func @transform_2(%arg0: i32) -> (i32, i32) {
    %c0_i32 = arith.constant 0 : i32
    %c0_i32_0 = arith.constant 0 : i32
    return %arg0, %c0_i32 : i32, i32
  }
}

module attributes {stable_mosaic.version = 11 : i64} {
  func.func @_mlp_kernel_concat(%arg0: i32, %arg1: memref<16x32xf32, #tpu.memory_space<vmem>>, %arg2: memref<16x32xf32, #tpu.memory_space<vmem>>, %arg3: memref<16x32xf32, #tpu.memory_space<vmem>>, %arg4: memref<96x32xbf16, #tpu.memory_space<vmem>>, %arg5: memref<1x32xf32, #tpu.memory_space<vmem>>, %arg6: memref<16x32xf32, #tpu.memory_space<vmem>>, %arg7: memref<16x96xbf16, #tpu.memory_space<vmem>>) attributes {dimension_semantics = [#tpu.dimension_semantics<parallel>], iteration_bounds = array<i64: 1>, scalar_prefetch = 0 : i64, scratch_operands = 1 : i64, tpu.core_type = #tpu.core_type<tc>, window_params = [{transform_indices = @transform_0, window_bounds = array<i64: 16, 32>}, {transform_indices = @transform_1, window_bounds = array<i64: 16, 32>}, {transform_indices = @transform_2, window_bounds = array<i64: 16, 32>}, {pipeline_mode = #tpu.pipeline_mode<synchronous>, transform_indices = @transform_3, window_bounds = array<i64: 96, 32>}, {pipeline_mode = #tpu.pipeline_mode<synchronous>, transform_indices = @transform_4, window_bounds = array<i64: 1, 32>}, {transform_indices = @transform_5, window_bounds = array<i64: 16, 32>}]} {
    %c0 = arith.constant 0 : index
    %c0_0 = arith.constant 0 : index
    %0 = vector.load %arg1[%c0, %c0_0] : memref<16x32xf32, #tpu.memory_space<vmem>>, vector<16x32xf32>
    %1 = arith.truncf %0 : vector<16x32xf32> to vector<16x32xbf16>
    %c0_1 = arith.constant 0 : index
    %c0_2 = arith.constant 0 : index
    %2 = vector.load %arg7[%c0_1, %c0_2] : memref<16x96xbf16, #tpu.memory_space<vmem>>, vector<16x32xbf16>
    tpu.vector_store %arg7[%c0_1, %c0_2], %1 {strides = array<i32>} : memref<16x96xbf16, #tpu.memory_space<vmem>>, vector<16x32xbf16>,
    %c0_3 = arith.constant 0 : index
    %c0_4 = arith.constant 0 : index
    %3 = vector.load %arg2[%c0_3, %c0_4] : memref<16x32xf32, #tpu.memory_space<vmem>>, vector<16x32xf32>
    %4 = arith.truncf %3 : vector<16x32xf32> to vector<16x32xbf16>
    %c0_5 = arith.constant 0 : index
    %c32 = arith.constant 32 : index
    %5 = vector.load %arg7[%c0_5, %c32] : memref<16x96xbf16, #tpu.memory_space<vmem>>, vector<16x32xbf16>
    tpu.vector_store %arg7[%c0_5, %c32], %4 {strides = array<i32>} : memref<16x96xbf16, #tpu.memory_space<vmem>>, vector<16x32xbf16>,
    %c0_6 = arith.constant 0 : index
    %c0_7 = arith.constant 0 : index
    %6 = vector.load %arg3[%c0_6, %c0_7] : memref<16x32xf32, #tpu.memory_space<vmem>>, vector<16x32xf32>
    %7 = arith.truncf %6 : vector<16x32xf32> to vector<16x32xbf16>
    %c0_8 = arith.constant 0 : index
    %c64 = arith.constant 64 : index
    %8 = vector.load %arg7[%c0_8, %c64] : memref<16x96xbf16, #tpu.memory_space<vmem>>, vector<16x32xbf16>
    tpu.vector_store %arg7[%c0_8, %c64], %7 {strides = array<i32>} : memref<16x96xbf16, #tpu.memory_space<vmem>>, vector<16x32xbf16>,
    %c0_9 = arith.constant 0 : index
    %c0_10 = arith.constant 0 : index
    %9 = vector.load %arg7[%c0_9, %c0_10] : memref<16x96xbf16, #tpu.memory_space<vmem>>, vector<16x96xbf16>
    %c0_11 = arith.constant 0 : index
    %c0_12 = arith.constant 0 : index
    %10 = vector.load %arg4[%c0_11, %c0_12] : memref<96x32xbf16, #tpu.memory_space<vmem>>, vector<96x32xbf16>
    %cst = arith.constant dense<0.000000e+00> : vector<16x32xf32>
    %11 = tpu.matmul %9, %10, %cst {dimension_numbers = #tpu.dot_dimension_numbers<[1], [0], [0], [1], [0, 0, 1, 1], [], []>} : vector<16x96xbf16>, vector<96x32xbf16>, vector<16x32xf32> -> vector<16x32xf32>
    %c0_13 = arith.constant 0 : index
    %c0_14 = arith.constant 0 : index
    %12 = vector.load %arg5[%c0_13, %c0_14] : memref<1x32xf32, #tpu.memory_space<vmem>>, vector<1x32xf32>
    %13 = vector.broadcast %12 : vector<1x32xf32> to vector<16x32xf32>
    %14 = arith.addf %11, %13 : vector<16x32xf32>
    %cst_15 = arith.constant 5.000000e-01 : f32
    %15 = vector.broadcast %cst_15 : f32 to vector<16x32xf32>
    %16 = arith.mulf %15, %14 : vector<16x32xf32>
    %cst_16 = arith.constant 4.471500e-02 : f32
    %17 = vector.broadcast %cst_16 : f32 to vector<16x32xf32>
    %18 = arith.mulf %17, %14 : vector<16x32xf32>
    %19 = arith.mulf %18, %14 : vector<16x32xf32>
    %20 = arith.mulf %19, %14 : vector<16x32xf32>
    %21 = arith.addf %14, %20 : vector<16x32xf32>
    %cst_17 = arith.constant 0.797884583 : f32
    %22 = vector.broadcast %cst_17 : f32 to vector<16x32xf32>
    %23 = arith.mulf %22, %21 : vector<16x32xf32>
    %24 = math.tanh %23 : vector<16x32xf32>
    %cst_18 = arith.constant 1.000000e+00 : f32
    %25 = vector.broadcast %cst_18 : f32 to vector<16x32xf32>
    %26 = arith.addf %25, %24 : vector<16x32xf32>
    %27 = arith.mulf %16, %26 : vector<16x32xf32>
    %c0_19 = arith.constant 0 : index
    %c0_20 = arith.constant 0 : index
    %28 = vector.load %arg6[%c0_19, %c0_20] : memref<16x32xf32, #tpu.memory_space<vmem>>, vector<16x32xf32>
    tpu.vector_store %arg6[%c0_19, %c0_20], %27 {strides = array<i32>} : memref<16x32xf32, #tpu.memory_space<vmem>>, vector<16x32xf32>,
    return
  }
  func.func @transform_0(%arg0: i32) -> (i32, i32) {
    %c0_i32 = arith.constant 0 : i32
    %c0_i32_0 = arith.constant 0 : i32
    return %arg0, %c0_i32 : i32, i32
  }
  func.func @transform_1(%arg0: i32) -> (i32, i32) {
    %c0_i32 = arith.constant 0 : i32
    %c0_i32_0 = arith.constant 0 : i32
    return %arg0, %c0_i32 : i32, i32
  }
  func.func @transform_2(%arg0: i32) -> (i32, i32) {
    %c0_i32 = arith.constant 0 : i32
    %c0_i32_0 = arith.constant 0 : i32
    return %arg0, %c0_i32 : i32, i32
  }
  func.func @transform_3(%arg0: i32) -> (i32, i32) {
    %c0_i32 = arith.constant 0 : i32
    %c0_i32_0 = arith.constant 0 : i32
    %c0_i32_1 = arith.constant 0 : i32
    return %c0_i32, %c0_i32_0 : i32, i32
  }
  func.func @transform_4(%arg0: i32) -> (i32, i32) {
    %c0_i32 = arith.constant 0 : i32
    %c0_i32_0 = arith.constant 0 : i32
    %c0_i32_1 = arith.constant 0 : i32
    return %c0_i32, %c0_i32_0 : i32, i32
  }
  func.func @transform_5(%arg0: i32) -> (i32, i32) {
    %c0_i32 = arith.constant 0 : i32
    %c0_i32_0 = arith.constant 0 : i32
    return %arg0, %c0_i32 : i32, i32
  }
}

module attributes {stable_mosaic.version = 11 : i64} {
  func.func @_linear_kernel(%arg0: i32, %arg1: memref<16x20xf32, #tpu.memory_space<vmem>>, %arg2: memref<20x32xbf16, #tpu.memory_space<vmem>>, %arg3: memref<1x32xf32, #tpu.memory_space<vmem>>, %arg4: memref<16x32xf32, #tpu.memory_space<vmem>>) attributes {dimension_semantics = [#tpu.dimension_semantics<parallel>], iteration_bounds = array<i64: 1>, scalar_prefetch = 0 : i64, scratch_operands = 0 : i64, tpu.core_type = #tpu.core_type<tc>, window_params = [{transform_indices = @transform_0, window_bounds = array<i64: 16, 20>}, {pipeline_mode = #tpu.pipeline_mode<synchronous>, transform_indices = @transform_1, window_bounds = array<i64: 20, 32>}, {pipeline_mode = #tpu.pipeline_mode<synchronous>, transform_indices = @transform_2, window_bounds = array<i64: 1, 32>}, {transform_indices = @transform_3, window_bounds = array<i64: 16, 32>}]} {
    %c0 = arith.constant 0 : index
    %c0_0 = arith.constant 0 : index
    %0 = vector.load %arg1[%c0, %c0_0] : memref<16x20xf32, #tpu.memory_space<vmem>>, vector<16x20xf32>
    %1 = arith.truncf %0 : vector<16x20xf32> to vector<16x20xbf16>
    %c0_1 = arith.constant 0 : index
    %c0_2 = arith.constant 0 : index
    %2 = vector.load %arg2[%c0_1, %c0_2] : memref<20x32xbf16, #tpu.memory_space<vmem>>, vector<20x32xbf16>
    %cst = arith.constant dense<0.000000e+00> : vector<16x32xf32>
    %3 = tpu.matmul %1, %2, %cst {dimension_numbers = #tpu.dot_dimension_numbers<[1], [0], [0], [1], [0, 0, 1, 1], [], []>} : vector<16x20xbf16>, vector<20x32xbf16>, vector<16x32xf32> -> vector<16x32xf32>
    %c0_3 = arith.constant 0 : index
    %c0_4 = arith.constant 0 : index
    %4 = vector.load %arg3[%c0_3, %c0_4] : memref<1x32xf32, #tpu.memory_space<vmem>>, vector<1x32xf32>
    %5 = vector.broadcast %4 : vector<1x32xf32> to vector<16x32xf32>
    %6 = arith.addf %3, %5 : vector<16x32xf32>
    %c0_5 = arith.constant 0 : index
    %c0_6 = arith.constant 0 : index
    %7 = vector.load %arg4[%c0_5, %c0_6] : memref<16x32xf32, #tpu.memory_space<vmem>>, vector<16x32xf32>
    tpu.vector_store %arg4[%c0_5, %c0_6], %6 {strides = array<i32>} : memref<16x32xf32, #tpu.memory_space<vmem>>, vector<16x32xf32>,
    return
  }
  func.func @transform_0(%arg0: i32) -> (i32, i32) {
    %c0_i32 = arith.constant 0 : i32
    %c0_i32_0 = arith.constant 0 : i32
    return %arg0, %c0_i32 : i32, i32
  }
  func.func @transform_1(%arg0: i32) -> (i32, i32) {
    %c0_i32 = arith.constant 0 : i32
    %c0_i32_0 = arith.constant 0 : i32
    %c0_i32_1 = arith.constant 0 : i32
    return %c0_i32, %c0_i32_0 : i32, i32
  }
  func.func @transform_2(%arg0: i32) -> (i32, i32) {
    %c0_i32 = arith.constant 0 : i32
    %c0_i32_0 = arith.constant 0 : i32
    %c0_i32_1 = arith.constant 0 : i32
    return %c0_i32, %c0_i32_0 : i32, i32
  }
  func.func @transform_3(%arg0: i32) -> (i32, i32) {
    %c0_i32 = arith.constant 0 : i32
    %c0_i32_0 = arith.constant 0 : i32
    return %arg0, %c0_i32 : i32, i32
  }
}

module attributes {stable_mosaic.version = 11 : i64} {
  func.func @_cross_layer_kernel(%arg0: i32, %arg1: i32, %arg2: memref<1x2x8x32xf32, #tpu.memory_space<vmem>>, %arg3: memref<1x2x8x32xf32, #tpu.memory_space<vmem>>, %arg4: memref<1x2x1x8xf32, #tpu.memory_space<vmem>>, %arg5: memref<1x32x32xbf16, #tpu.memory_space<vmem>>, %arg6: memref<1x1x32xf32, #tpu.memory_space<vmem>>, %arg7: memref<1x32x64xbf16, #tpu.memory_space<vmem>>, %arg8: memref<1x1x64xf32, #tpu.memory_space<vmem>>, %arg9: memref<1x32x32xbf16, #tpu.memory_space<vmem>>, %arg10: memref<1x1x32xf32, #tpu.memory_space<vmem>>, %arg11: memref<1x2x32xf32, #tpu.memory_space<vmem>>, %arg12: memref<1x32x128xbf16, #tpu.memory_space<vmem>>, %arg13: memref<1x1x128xf32, #tpu.memory_space<vmem>>, %arg14: memref<1x128x32xbf16, #tpu.memory_space<vmem>>, %arg15: memref<1x1x32xf32, #tpu.memory_space<vmem>>, %arg16: memref<1x2x32xf32, #tpu.memory_space<vmem>>, %arg17: memref<1x2x8x32xf32, #tpu.memory_space<vmem>>, %arg18: memref<8x32xf32, #tpu.memory_space<vmem>>) attributes {dimension_semantics = [#tpu.dimension_semantics<parallel>, #tpu.dimension_semantics<parallel>], iteration_bounds = array<i64: 2, 1>, scalar_prefetch = 0 : i64, scratch_operands = 1 : i64, tpu.core_type = #tpu.core_type<tc>, window_params = [{transform_indices = @transform_0, window_bounds = array<i64: 1, 2, 8, 32>}, {transform_indices = @transform_1, window_bounds = array<i64: 1, 2, 8, 32>}, {transform_indices = @transform_2, window_bounds = array<i64: 1, 2, 1, 8>}, {transform_indices = @transform_3, window_bounds = array<i64: 1, 32, 32>}, {transform_indices = @transform_4, window_bounds = array<i64: 1, 1, 32>}, {transform_indices = @transform_5, window_bounds = array<i64: 1, 32, 64>}, {transform_indices = @transform_6, window_bounds = array<i64: 1, 1, 64>}, {transform_indices = @transform_7, window_bounds = array<i64: 1, 32, 32>}, {transform_indices = @transform_8, window_bounds = array<i64: 1, 1, 32>}, {transform_indices = @transform_9, window_bounds = array<i64: 1, 2, 32>}, {transform_indices = @transform_10, window_bounds = array<i64: 1, 32, 128>}, {transform_indices = @transform_11, window_bounds = array<i64: 1, 1, 128>}, {transform_indices = @transform_12, window_bounds = array<i64: 1, 128, 32>}, {transform_indices = @transform_13, window_bounds = array<i64: 1, 1, 32>}, {transform_indices = @transform_14, window_bounds = array<i64: 1, 2, 32>}, {transform_indices = @transform_15, window_bounds = array<i64: 1, 2, 8, 32>}]} {
    %c0 = arith.constant 0 : index
    %c0_0 = arith.constant 0 : index
    %c0_1 = arith.constant 0 : index
    %0 = vector.load %arg5[%c0, %c0_0, %c0_1] : memref<1x32x32xbf16, #tpu.memory_space<vmem>>, vector<1x32x32xbf16>
    %1 = vector.shape_cast %0 : vector<1x32x32xbf16> to vector<32x32xbf16>
    %c0_2 = arith.constant 0 : index
    %c0_3 = arith.constant 0 : index
    %c0_4 = arith.constant 0 : index
    %2 = vector.load %arg7[%c0_2, %c0_3, %c0_4] : memref<1x32x64xbf16, #tpu.memory_space<vmem>>, vector<1x32x64xbf16>
    %3 = vector.shape_cast %2 : vector<1x32x64xbf16> to vector<32x64xbf16>
    %c0_5 = arith.constant 0 : index
    %c0_6 = arith.constant 0 : index
    %c0_7 = arith.constant 0 : index
    %4 = vector.load %arg9[%c0_5, %c0_6, %c0_7] : memref<1x32x32xbf16, #tpu.memory_space<vmem>>, vector<1x32x32xbf16>
    %5 = vector.shape_cast %4 : vector<1x32x32xbf16> to vector<32x32xbf16>
    %c0_8 = arith.constant 0 : index
    %c0_9 = arith.constant 0 : index
    %c0_10 = arith.constant 0 : index
    %6 = vector.load %arg12[%c0_8, %c0_9, %c0_10] : memref<1x32x128xbf16, #tpu.memory_space<vmem>>, vector<1x32x128xbf16>
    %7 = vector.shape_cast %6 : vector<1x32x128xbf16> to vector<32x128xbf16>
    %c0_11 = arith.constant 0 : index
    %c0_12 = arith.constant 0 : index
    %c0_13 = arith.constant 0 : index
    %8 = vector.load %arg14[%c0_11, %c0_12, %c0_13] : memref<1x128x32xbf16, #tpu.memory_space<vmem>>, vector<1x128x32xbf16>
    %9 = vector.shape_cast %8 : vector<1x128x32xbf16> to vector<128x32xbf16>
    %c0_14 = arith.constant 0 : index
    %c0_15 = arith.constant 0 : index
    %c0_16 = arith.constant 0 : index
    %10 = vector.load %arg6[%c0_14, %c0_15, %c0_16] : memref<1x1x32xf32, #tpu.memory_space<vmem>>, vector<1x1x32xf32>
    %11 = vector.shape_cast %10 : vector<1x1x32xf32> to vector<1x32xf32>
    %c0_17 = arith.constant 0 : index
    %c0_18 = arith.constant 0 : index
    %c0_19 = arith.constant 0 : index
    %12 = vector.load %arg8[%c0_17, %c0_18, %c0_19] : memref<1x1x64xf32, #tpu.memory_space<vmem>>, vector<1x1x64xf32>
    %13 = vector.shape_cast %12 : vector<1x1x64xf32> to vector<1x64xf32>
    %c0_20 = arith.constant 0 : index
    %c0_21 = arith.constant 0 : index
    %c0_22 = arith.constant 0 : index
    %14 = vector.load %arg10[%c0_20, %c0_21, %c0_22] : memref<1x1x32xf32, #tpu.memory_space<vmem>>, vector<1x1x32xf32>
    %15 = vector.shape_cast %14 : vector<1x1x32xf32> to vector<1x32xf32>
    %c0_23 = arith.constant 0 : index
    %c0_24 = arith.constant 0 : index
    %c0_25 = arith.constant 0 : index
    %16 = vector.load %arg13[%c0_23, %c0_24, %c0_25] : memref<1x1x128xf32, #tpu.memory_space<vmem>>, vector<1x1x128xf32>
    %17 = vector.shape_cast %16 : vector<1x1x128xf32> to vector<1x128xf32>
    %c0_26 = arith.constant 0 : index
    %c0_27 = arith.constant 0 : index
    %c0_28 = arith.constant 0 : index
    %18 = vector.load %arg15[%c0_26, %c0_27, %c0_28] : memref<1x1x32xf32, #tpu.memory_space<vmem>>, vector<1x1x32xf32>
    %19 = vector.shape_cast %18 : vector<1x1x32xf32> to vector<1x32xf32>
    %c0_29 = arith.constant 0 : index
    %c0_30 = arith.constant 0 : index
    %c0_31 = arith.constant 0 : index
    %20 = vector.load %arg11[%c0_29, %c0_30, %c0_31] : memref<1x2x32xf32, #tpu.memory_space<vmem>>, vector<1x2x32xf32>
    %21 = vector.shape_cast %20 : vector<1x2x32xf32> to vector<2x32xf32>
    %c0_32 = arith.constant 0 : index
    %c0_33 = arith.constant 0 : index
    %c0_34 = arith.constant 0 : index
    %22 = vector.load %arg16[%c0_32, %c0_33, %c0_34] : memref<1x2x32xf32, #tpu.memory_space<vmem>>, vector<1x2x32xf32>
    %23 = vector.shape_cast %22 : vector<1x2x32xf32> to vector<2x32xf32>
    %c0_i32 = arith.constant 0 : i32
    %c0_35 = arith.constant 0 : index
    %24 = arith.index_cast %c0_i32 : i32 to index
    %c0_36 = arith.constant 0 : index
    %c0_37 = arith.constant 0 : index
    %25 = vector.load %arg2[%c0_35, %24, %c0_36, %c0_37] : memref<1x2x8x32xf32, #tpu.memory_space<vmem>>, vector<1x1x8x32xf32>
    %26 = vector.shape_cast %25 : vector<1x1x8x32xf32> to vector<8x32xf32>
    %c0_38 = arith.constant 0 : index
    %27 = arith.index_cast %c0_i32 : i32 to index
    %c0_39 = arith.constant 0 : index
    %c0_40 = arith.constant 0 : index
    %28 = vector.load %arg3[%c0_38, %27, %c0_39, %c0_40] : memref<1x2x8x32xf32, #tpu.memory_space<vmem>>, vector<1x1x8x32xf32>
    %29 = vector.shape_cast %28 : vector<1x1x8x32xf32> to vector<8x32xf32>
    %30 = arith.truncf %29 : vector<8x32xf32> to vector<8x32xbf16>
    %c0_41 = arith.constant 0 : index
    %31 = arith.index_cast %c0_i32 : i32 to index
    %c0_42 = arith.constant 0 : index
    %c0_43 = arith.constant 0 : index
    %32 = vector.load %arg4[%c0_41, %31, %c0_42, %c0_43] : memref<1x2x1x8xf32, #tpu.memory_space<vmem>>, vector<1x1x1x8xf32>
    %33 = vector.shape_cast %32 : vector<1x1x1x8xf32> to vector<1x8xf32>
    %34 = arith.truncf %26 : vector<8x32xf32> to vector<8x32xbf16>
    %cst = arith.constant dense<0.000000e+00> : vector<8x32xf32>
    %35 = tpu.matmul %34, %1, %cst {dimension_numbers = #tpu.dot_dimension_numbers<[1], [0], [0], [1], [0, 0, 1, 1], [], []>} : vector<8x32xbf16>, vector<32x32xbf16>, vector<8x32xf32> -> vector<8x32xf32>
    %36 = vector.broadcast %11 : vector<1x32xf32> to vector<8x32xf32>
    %37 = arith.addf %35, %36 : vector<8x32xf32>
    %cst_44 = arith.constant dense<0.000000e+00> : vector<8x64xf32>
    %38 = tpu.matmul %30, %3, %cst_44 {dimension_numbers = #tpu.dot_dimension_numbers<[1], [0], [0], [1], [0, 0, 1, 1], [], []>} : vector<8x32xbf16>, vector<32x64xbf16>, vector<8x64xf32> -> vector<8x64xf32>
    %39 = vector.broadcast %13 : vector<1x64xf32> to vector<8x64xf32>
    %40 = arith.addf %38, %39 : vector<8x64xf32>
    %41 = vector.extract_strided_slice %40 {offsets = [0, 0], sizes = [8, 32], strides = [1, 1]} : vector<8x64xf32> to vector<8x32xf32>
    %42 = vector.extract_strided_slice %40 {offsets = [0, 32], sizes = [8, 32], strides = [1, 1]} : vector<8x64xf32> to vector<8x32xf32>
    %43 = vector.extract_strided_slice %37 {offsets = [0, 0], sizes = [8, 8], strides = [1, 1]} : vector<8x32xf32> to vector<8x8xf32>
    %44 = arith.truncf %43 : vector<8x8xf32> to vector<8x8xbf16>
    %45 = vector.extract_strided_slice %41 {offsets = [0, 0], sizes = [8, 8], strides = [1, 1]} : vector<8x32xf32> to vector<8x8xf32>
    %46 = arith.truncf %45 : vector<8x8xf32> to vector<8x8xbf16>
    %47 = vector.extract_strided_slice %42 {offsets = [0, 0], sizes = [8, 8], strides = [1, 1]} : vector<8x32xf32> to vector<8x8xf32>
    %48 = arith.truncf %47 : vector<8x8xf32> to vector<8x8xbf16>
    %cst_45 = arith.constant dense<0.000000e+00> : vector<8x8xf32>
    %49 = tpu.matmul %44, %46, %cst_45 {dimension_numbers = #tpu.dot_dimension_numbers<[1], [1], [0], [0], [0, 0, 1, 0], [], []>} : vector<8x8xbf16>, vector<8x8xbf16>, vector<8x8xf32> -> vector<8x8xf32>
    %cst_46 = arith.constant 0.353553385 : f32
    %50 = vector.broadcast %cst_46 : f32 to vector<8x8xf32>
    %51 = arith.mulf %49, %50 : vector<8x8xf32>
    %52 = vector.broadcast %33 : vector<1x8xf32> to vector<8x8xf32>
    %53 = arith.addf %51, %52 : vector<8x8xf32>
    %cst_47 = arith.constant dense<0xFF800000> : vector<8xf32>
    %54 = vector.multi_reduction <maximumf>, %53, %cst_47 [1] : vector<8x8xf32> to vector<8xf32>
    %55 = vector.shape_cast %54 : vector<8xf32> to vector<8x1xf32>
    %56 = vector.broadcast %55 : vector<8x1xf32> to vector<8x8xf32>
    %57 = arith.subf %53, %56 : vector<8x8xf32>
    %58 = math.exp %57 : vector<8x8xf32>
    %cst_48 = arith.constant dense<0.000000e+00> : vector<8xf32>
    %59 = vector.multi_reduction <add>, %58, %cst_48 [1] : vector<8x8xf32> to vector<8xf32>
    %60 = vector.shape_cast %59 : vector<8xf32> to vector<8x1xf32>
    %61 = tpu.reciprocal %60 {approx = true} : vector<8x1xf32> -> vector<8x1xf32>
    %62 = vector.broadcast %61 : vector<8x1xf32> to vector<8x8xf32>
    %63 = arith.mulf %58, %62 : vector<8x8xf32>
    %64 = arith.truncf %63 : vector<8x8xf32> to vector<8x8xbf16>
    %cst_49 = arith.constant dense<0.000000e+00> : vector<8x8xf32>
    %65 = tpu.matmul %64, %48, %cst_49 {dimension_numbers = #tpu.dot_dimension_numbers<[1], [0], [0], [1], [0, 0, 1, 1], [], []>} : vector<8x8xbf16>, vector<8x8xbf16>, vector<8x8xf32> -> vector<8x8xf32>
    %c0_50 = arith.constant 0 : index
    %c0_51 = arith.constant 0 : index
    %66 = vector.load %arg18[%c0_50, %c0_51] : memref<8x32xf32, #tpu.memory_space<vmem>>, vector<8x8xf32>
    tpu.vector_store %arg18[%c0_50, %c0_51], %65 {strides = array<i32>} : memref<8x32xf32, #tpu.memory_space<vmem>>, vector<8x8xf32>,
    %67 = vector.extract_strided_slice %37 {offsets = [0, 8], sizes = [8, 8], strides = [1, 1]} : vector<8x32xf32> to vector<8x8xf32>
    %68 = arith.truncf %67 : vector<8x8xf32> to vector<8x8xbf16>
    %69 = vector.extract_strided_slice %41 {offsets = [0, 8], sizes = [8, 8], strides = [1, 1]} : vector<8x32xf32> to vector<8x8xf32>
    %70 = arith.truncf %69 : vector<8x8xf32> to vector<8x8xbf16>
    %71 = vector.extract_strided_slice %42 {offsets = [0, 8], sizes = [8, 8], strides = [1, 1]} : vector<8x32xf32> to vector<8x8xf32>
    %72 = arith.truncf %71 : vector<8x8xf32> to vector<8x8xbf16>
    %cst_52 = arith.constant dense<0.000000e+00> : vector<8x8xf32>
    %73 = tpu.matmul %68, %70, %cst_52 {dimension_numbers = #tpu.dot_dimension_numbers<[1], [1], [0], [0], [0, 0, 1, 0], [], []>} : vector<8x8xbf16>, vector<8x8xbf16>, vector<8x8xf32> -> vector<8x8xf32>
    %cst_53 = arith.constant 0.353553385 : f32
    %74 = vector.broadcast %cst_53 : f32 to vector<8x8xf32>
    %75 = arith.mulf %73, %74 : vector<8x8xf32>
    %76 = vector.broadcast %33 : vector<1x8xf32> to vector<8x8xf32>
    %77 = arith.addf %75, %76 : vector<8x8xf32>
    %cst_54 = arith.constant dense<0xFF800000> : vector<8xf32>
    %78 = vector.multi_reduction <maximumf>, %77, %cst_54 [1] : vector<8x8xf32> to vector<8xf32>
    %79 = vector.shape_cast %78 : vector<8xf32> to vector<8x1xf32>
    %80 = vector.broadcast %79 : vector<8x1xf32> to vector<8x8xf32>
    %81 = arith.subf %77, %80 : vector<8x8xf32>
    %82 = math.exp %81 : vector<8x8xf32>
    %cst_55 = arith.constant dense<0.000000e+00> : vector<8xf32>
    %83 = vector.multi_reduction <add>, %82, %cst_55 [1] : vector<8x8xf32> to vector<8xf32>
    %84 = vector.shape_cast %83 : vector<8xf32> to vector<8x1xf32>
    %85 = tpu.reciprocal %84 {approx = true} : vector<8x1xf32> -> vector<8x1xf32>
    %86 = vector.broadcast %85 : vector<8x1xf32> to vector<8x8xf32>
    %87 = arith.mulf %82, %86 : vector<8x8xf32>
    %88 = arith.truncf %87 : vector<8x8xf32> to vector<8x8xbf16>
    %cst_56 = arith.constant dense<0.000000e+00> : vector<8x8xf32>
    %89 = tpu.matmul %88, %72, %cst_56 {dimension_numbers = #tpu.dot_dimension_numbers<[1], [0], [0], [1], [0, 0, 1, 1], [], []>} : vector<8x8xbf16>, vector<8x8xbf16>, vector<8x8xf32> -> vector<8x8xf32>
    %c0_57 = arith.constant 0 : index
    %c8 = arith.constant 8 : index
    %90 = vector.load %arg18[%c0_57, %c8] : memref<8x32xf32, #tpu.memory_space<vmem>>, vector<8x8xf32>
    tpu.vector_store %arg18[%c0_57, %c8], %89 {strides = array<i32>} : memref<8x32xf32, #tpu.memory_space<vmem>>, vector<8x8xf32>,
    %91 = vector.extract_strided_slice %37 {offsets = [0, 16], sizes = [8, 8], strides = [1, 1]} : vector<8x32xf32> to vector<8x8xf32>
    %92 = arith.truncf %91 : vector<8x8xf32> to vector<8x8xbf16>
    %93 = vector.extract_strided_slice %41 {offsets = [0, 16], sizes = [8, 8], strides = [1, 1]} : vector<8x32xf32> to vector<8x8xf32>
    %94 = arith.truncf %93 : vector<8x8xf32> to vector<8x8xbf16>
    %95 = vector.extract_strided_slice %42 {offsets = [0, 16], sizes = [8, 8], strides = [1, 1]} : vector<8x32xf32> to vector<8x8xf32>
    %96 = arith.truncf %95 : vector<8x8xf32> to vector<8x8xbf16>
    %cst_58 = arith.constant dense<0.000000e+00> : vector<8x8xf32>
    %97 = tpu.matmul %92, %94, %cst_58 {dimension_numbers = #tpu.dot_dimension_numbers<[1], [1], [0], [0], [0, 0, 1, 0], [], []>} : vector<8x8xbf16>, vector<8x8xbf16>, vector<8x8xf32> -> vector<8x8xf32>
    %cst_59 = arith.constant 0.353553385 : f32
    %98 = vector.broadcast %cst_59 : f32 to vector<8x8xf32>
    %99 = arith.mulf %97, %98 : vector<8x8xf32>
    %100 = vector.broadcast %33 : vector<1x8xf32> to vector<8x8xf32>
    %101 = arith.addf %99, %100 : vector<8x8xf32>
    %cst_60 = arith.constant dense<0xFF800000> : vector<8xf32>
    %102 = vector.multi_reduction <maximumf>, %101, %cst_60 [1] : vector<8x8xf32> to vector<8xf32>
    %103 = vector.shape_cast %102 : vector<8xf32> to vector<8x1xf32>
    %104 = vector.broadcast %103 : vector<8x1xf32> to vector<8x8xf32>
    %105 = arith.subf %101, %104 : vector<8x8xf32>
    %106 = math.exp %105 : vector<8x8xf32>
    %cst_61 = arith.constant dense<0.000000e+00> : vector<8xf32>
    %107 = vector.multi_reduction <add>, %106, %cst_61 [1] : vector<8x8xf32> to vector<8xf32>
    %108 = vector.shape_cast %107 : vector<8xf32> to vector<8x1xf32>
    %109 = tpu.reciprocal %108 {approx = true} : vector<8x1xf32> -> vector<8x1xf32>
    %110 = vector.broadcast %109 : vector<8x1xf32> to vector<8x8xf32>
    %111 = arith.mulf %106, %110 : vector<8x8xf32>
    %112 = arith.truncf %111 : vector<8x8xf32> to vector<8x8xbf16>
    %cst_62 = arith.constant dense<0.000000e+00> : vector<8x8xf32>
    %113 = tpu.matmul %112, %96, %cst_62 {dimension_numbers = #tpu.dot_dimension_numbers<[1], [0], [0], [1], [0, 0, 1, 1], [], []>} : vector<8x8xbf16>, vector<8x8xbf16>, vector<8x8xf32> -> vector<8x8xf32>
    %c0_63 = arith.constant 0 : index
    %c16 = arith.constant 16 : index
    %114 = vector.load %arg18[%c0_63, %c16] : memref<8x32xf32, #tpu.memory_space<vmem>>, vector<8x8xf32>
    tpu.vector_store %arg18[%c0_63, %c16], %113 {strides = array<i32>} : memref<8x32xf32, #tpu.memory_space<vmem>>, vector<8x8xf32>,
    %115 = vector.extract_strided_slice %37 {offsets = [0, 24], sizes = [8, 8], strides = [1, 1]} : vector<8x32xf32> to vector<8x8xf32>
    %116 = arith.truncf %115 : vector<8x8xf32> to vector<8x8xbf16>
    %117 = vector.extract_strided_slice %41 {offsets = [0, 24], sizes = [8, 8], strides = [1, 1]} : vector<8x32xf32> to vector<8x8xf32>
    %118 = arith.truncf %117 : vector<8x8xf32> to vector<8x8xbf16>
    %119 = vector.extract_strided_slice %42 {offsets = [0, 24], sizes = [8, 8], strides = [1, 1]} : vector<8x32xf32> to vector<8x8xf32>
    %120 = arith.truncf %119 : vector<8x8xf32> to vector<8x8xbf16>
    %cst_64 = arith.constant dense<0.000000e+00> : vector<8x8xf32>
    %121 = tpu.matmul %116, %118, %cst_64 {dimension_numbers = #tpu.dot_dimension_numbers<[1], [1], [0], [0], [0, 0, 1, 0], [], []>} : vector<8x8xbf16>, vector<8x8xbf16>, vector<8x8xf32> -> vector<8x8xf32>
    %cst_65 = arith.constant 0.353553385 : f32
    %122 = vector.broadcast %cst_65 : f32 to vector<8x8xf32>
    %123 = arith.mulf %121, %122 : vector<8x8xf32>
    %124 = vector.broadcast %33 : vector<1x8xf32> to vector<8x8xf32>
    %125 = arith.addf %123, %124 : vector<8x8xf32>
    %cst_66 = arith.constant dense<0xFF800000> : vector<8xf32>
    %126 = vector.multi_reduction <maximumf>, %125, %cst_66 [1] : vector<8x8xf32> to vector<8xf32>
    %127 = vector.shape_cast %126 : vector<8xf32> to vector<8x1xf32>
    %128 = vector.broadcast %127 : vector<8x1xf32> to vector<8x8xf32>
    %129 = arith.subf %125, %128 : vector<8x8xf32>
    %130 = math.exp %129 : vector<8x8xf32>
    %cst_67 = arith.constant dense<0.000000e+00> : vector<8xf32>
    %131 = vector.multi_reduction <add>, %130, %cst_67 [1] : vector<8x8xf32> to vector<8xf32>
    %132 = vector.shape_cast %131 : vector<8xf32> to vector<8x1xf32>
    %133 = tpu.reciprocal %132 {approx = true} : vector<8x1xf32> -> vector<8x1xf32>
    %134 = vector.broadcast %133 : vector<8x1xf32> to vector<8x8xf32>
    %135 = arith.mulf %130, %134 : vector<8x8xf32>
    %136 = arith.truncf %135 : vector<8x8xf32> to vector<8x8xbf16>
    %cst_68 = arith.constant dense<0.000000e+00> : vector<8x8xf32>
    %137 = tpu.matmul %136, %120, %cst_68 {dimension_numbers = #tpu.dot_dimension_numbers<[1], [0], [0], [1], [0, 0, 1, 1], [], []>} : vector<8x8xbf16>, vector<8x8xbf16>, vector<8x8xf32> -> vector<8x8xf32>
    %c0_69 = arith.constant 0 : index
    %c24 = arith.constant 24 : index
    %138 = vector.load %arg18[%c0_69, %c24] : memref<8x32xf32, #tpu.memory_space<vmem>>, vector<8x8xf32>
    tpu.vector_store %arg18[%c0_69, %c24], %137 {strides = array<i32>} : memref<8x32xf32, #tpu.memory_space<vmem>>, vector<8x8xf32>,
    %c0_70 = arith.constant 0 : index
    %c0_71 = arith.constant 0 : index
    %139 = vector.load %arg18[%c0_70, %c0_71] : memref<8x32xf32, #tpu.memory_space<vmem>>, vector<8x32xf32>
    %140 = arith.truncf %139 : vector<8x32xf32> to vector<8x32xbf16>
    %cst_72 = arith.constant dense<0.000000e+00> : vector<8x32xf32>
    %141 = tpu.matmul %140, %5, %cst_72 {dimension_numbers = #tpu.dot_dimension_numbers<[1], [0], [0], [1], [0, 0, 1, 1], [], []>} : vector<8x32xbf16>, vector<32x32xbf16>, vector<8x32xf32> -> vector<8x32xf32>
    %142 = vector.broadcast %15 : vector<1x32xf32> to vector<8x32xf32>
    %143 = arith.addf %141, %142 : vector<8x32xf32>
    %144 = arith.addf %143, %26 : vector<8x32xf32>
    %145 = vector.extract_strided_slice %21 {offsets = [0, 0], sizes = [1, 32], strides = [1, 1]} : vector<2x32xf32> to vector<1x32xf32>
    %146 = vector.extract_strided_slice %21 {offsets = [1, 0], sizes = [1, 32], strides = [1, 1]} : vector<2x32xf32> to vector<1x32xf32>
    %cst_73 = arith.constant dense<0.000000e+00> : vector<8xf32>
    %147 = vector.multi_reduction <add>, %144, %cst_73 [1] : vector<8x32xf32> to vector<8xf32>
    %148 = vector.shape_cast %147 : vector<8xf32> to vector<8x1xf32>
    %cst_74 = arith.constant 3.200000e+01 : f32
    %149 = vector.broadcast %cst_74 : f32 to vector<8x1xf32>
    %150 = arith.divf %148, %149 : vector<8x1xf32>
    %151 = vector.broadcast %150 : vector<8x1xf32> to vector<8x32xf32>
    %152 = arith.subf %144, %151 : vector<8x32xf32>
    %153 = arith.mulf %152, %152 : vector<8x32xf32>
    %cst_75 = arith.constant dense<0.000000e+00> : vector<8xf32>
    %154 = vector.multi_reduction <add>, %153, %cst_75 [1] : vector<8x32xf32> to vector<8xf32>
    %155 = vector.shape_cast %154 : vector<8xf32> to vector<8x1xf32>
    %cst_76 = arith.constant 3.200000e+01 : f32
    %156 = vector.broadcast %cst_76 : f32 to vector<8x1xf32>
    %157 = arith.divf %155, %156 : vector<8x1xf32>
    %cst_77 = arith.constant 9.99999996E-13 : f32
    %158 = vector.broadcast %cst_77 : f32 to vector<8x1xf32>
    %159 = arith.addf %157, %158 : vector<8x1xf32>
    %160 = math.rsqrt %159 : vector<8x1xf32>
    %161 = vector.broadcast %160 : vector<8x1xf32> to vector<8x32xf32>
    %162 = arith.mulf %152, %161 : vector<8x32xf32>
    %163 = vector.broadcast %145 : vector<1x32xf32> to vector<8x32xf32>
    %164 = arith.mulf %162, %163 : vector<8x32xf32>
    %165 = vector.broadcast %146 : vector<1x32xf32> to vector<8x32xf32>
    %166 = arith.addf %164, %165 : vector<8x32xf32>
    %167 = arith.truncf %166 : vector<8x32xf32> to vector<8x32xbf16>
    %cst_78 = arith.constant dense<0.000000e+00> : vector<8x128xf32>
    %168 = tpu.matmul %167, %7, %cst_78 {dimension_numbers = #tpu.dot_dimension_numbers<[1], [0], [0], [1], [0, 0, 1, 1], [], []>} : vector<8x32xbf16>, vector<32x128xbf16>, vector<8x128xf32> -> vector<8x128xf32>
    %169 = vector.broadcast %17 : vector<1x128xf32> to vector<8x128xf32>
    %170 = arith.addf %168, %169 : vector<8x128xf32>
    %cst_79 = arith.constant 5.000000e-01 : f32
    %171 = vector.broadcast %cst_79 : f32 to vector<8x128xf32>
    %172 = arith.mulf %171, %170 : vector<8x128xf32>
    %cst_80 = arith.constant 4.471500e-02 : f32
    %173 = vector.broadcast %cst_80 : f32 to vector<8x128xf32>
    %174 = arith.mulf %173, %170 : vector<8x128xf32>
    %175 = arith.mulf %174, %170 : vector<8x128xf32>
    %176 = arith.mulf %175, %170 : vector<8x128xf32>
    %177 = arith.addf %170, %176 : vector<8x128xf32>
    %cst_81 = arith.constant 0.797884583 : f32
    %178 = vector.broadcast %cst_81 : f32 to vector<8x128xf32>
    %179 = arith.mulf %178, %177 : vector<8x128xf32>
    %180 = math.tanh %179 : vector<8x128xf32>
    %cst_82 = arith.constant 1.000000e+00 : f32
    %181 = vector.broadcast %cst_82 : f32 to vector<8x128xf32>
    %182 = arith.addf %181, %180 : vector<8x128xf32>
    %183 = arith.mulf %172, %182 : vector<8x128xf32>
    %184 = arith.truncf %183 : vector<8x128xf32> to vector<8x128xbf16>
    %cst_83 = arith.constant dense<0.000000e+00> : vector<8x32xf32>
    %185 = tpu.matmul %184, %9, %cst_83 {dimension_numbers = #tpu.dot_dimension_numbers<[1], [0], [0], [1], [0, 0, 1, 1], [], []>} : vector<8x128xbf16>, vector<128x32xbf16>, vector<8x32xf32> -> vector<8x32xf32>
    %186 = vector.broadcast %19 : vector<1x32xf32> to vector<8x32xf32>
    %187 = arith.addf %185, %186 : vector<8x32xf32>
    %188 = arith.addf %187, %166 : vector<8x32xf32>
    %189 = vector.extract_strided_slice %23 {offsets = [0, 0], sizes = [1, 32], strides = [1, 1]} : vector<2x32xf32> to vector<1x32xf32>
    %190 = vector.extract_strided_slice %23 {offsets = [1, 0], sizes = [1, 32], strides = [1, 1]} : vector<2x32xf32> to vector<1x32xf32>
    %cst_84 = arith.constant dense<0.000000e+00> : vector<8xf32>
    %191 = vector.multi_reduction <add>, %188, %cst_84 [1] : vector<8x32xf32> to vector<8xf32>
    %192 = vector.shape_cast %191 : vector<8xf32> to vector<8x1xf32>
    %cst_85 = arith.constant 3.200000e+01 : f32
    %193 = vector.broadcast %cst_85 : f32 to vector<8x1xf32>
    %194 = arith.divf %192, %193 : vector<8x1xf32>
    %195 = vector.broadcast %194 : vector<8x1xf32> to vector<8x32xf32>
    %196 = arith.subf %188, %195 : vector<8x32xf32>
    %197 = arith.mulf %196, %196 : vector<8x32xf32>
    %cst_86 = arith.constant dense<0.000000e+00> : vector<8xf32>
    %198 = vector.multi_reduction <add>, %197, %cst_86 [1] : vector<8x32xf32> to vector<8xf32>
    %199 = vector.shape_cast %198 : vector<8xf32> to vector<8x1xf32>
    %cst_87 = arith.constant 3.200000e+01 : f32
    %200 = vector.broadcast %cst_87 : f32 to vector<8x1xf32>
    %201 = arith.divf %199, %200 : vector<8x1xf32>
    %cst_88 = arith.constant 9.99999996E-13 : f32
    %202 = vector.broadcast %cst_88 : f32 to vector<8x1xf32>
    %203 = arith.addf %201, %202 : vector<8x1xf32>
    %204 = math.rsqrt %203 : vector<8x1xf32>
    %205 = vector.broadcast %204 : vector<8x1xf32> to vector<8x32xf32>
    %206 = arith.mulf %196, %205 : vector<8x32xf32>
    %207 = vector.broadcast %189 : vector<1x32xf32> to vector<8x32xf32>
    %208 = arith.mulf %206, %207 : vector<8x32xf32>
    %209 = vector.broadcast %190 : vector<1x32xf32> to vector<8x32xf32>
    %210 = arith.addf %208, %209 : vector<8x32xf32>
    %c0_89 = arith.constant 0 : index
    %211 = arith.index_cast %c0_i32 : i32 to index
    %c0_90 = arith.constant 0 : index
    %c0_91 = arith.constant 0 : index
    %212 = vector.load %arg17[%c0_89, %211, %c0_90, %c0_91] : memref<1x2x8x32xf32, #tpu.memory_space<vmem>>, vector<1x1x8x32xf32>
    %213 = vector.shape_cast %212 : vector<1x1x8x32xf32> to vector<8x32xf32>
    %214 = vector.shape_cast %210 : vector<8x32xf32> to vector<1x1x8x32xf32>
    tpu.vector_store %arg17[%c0_89, %211, %c0_90, %c0_91], %214 {strides = array<i32>} : memref<1x2x8x32xf32, #tpu.memory_space<vmem>>, vector<1x1x8x32xf32>,
    %c1_i32 = arith.constant 1 : i32
    %c0_92 = arith.constant 0 : index
    %215 = arith.index_cast %c1_i32 : i32 to index
    %c0_93 = arith.constant 0 : index
    %c0_94 = arith.constant 0 : index
    %216 = vector.load %arg2[%c0_92, %215, %c0_93, %c0_94] : memref<1x2x8x32xf32, #tpu.memory_space<vmem>>, vector<1x1x8x32xf32>
    %217 = vector.shape_cast %216 : vector<1x1x8x32xf32> to vector<8x32xf32>
    %c0_95 = arith.constant 0 : index
    %218 = arith.index_cast %c1_i32 : i32 to index
    %c0_96 = arith.constant 0 : index
    %c0_97 = arith.constant 0 : index
    %219 = vector.load %arg3[%c0_95, %218, %c0_96, %c0_97] : memref<1x2x8x32xf32, #tpu.memory_space<vmem>>, vector<1x1x8x32xf32>
    %220 = vector.shape_cast %219 : vector<1x1x8x32xf32> to vector<8x32xf32>
    %221 = arith.truncf %220 : vector<8x32xf32> to vector<8x32xbf16>
    %c0_98 = arith.constant 0 : index
    %222 = arith.index_cast %c1_i32 : i32 to index
    %c0_99 = arith.constant 0 : index
    %c0_100 = arith.constant 0 : index
    %223 = vector.load %arg4[%c0_98, %222, %c0_99, %c0_100] : memref<1x2x1x8xf32, #tpu.memory_space<vmem>>, vector<1x1x1x8xf32>
    %224 = vector.shape_cast %223 : vector<1x1x1x8xf32> to vector<1x8xf32>
    %225 = arith.truncf %217 : vector<8x32xf32> to vector<8x32xbf16>
    %cst_101 = arith.constant dense<0.000000e+00> : vector<8x32xf32>
    %226 = tpu.matmul %225, %1, %cst_101 {dimension_numbers = #tpu.dot_dimension_numbers<[1], [0], [0], [1], [0, 0, 1, 1], [], []>} : vector<8x32xbf16>, vector<32x32xbf16>, vector<8x32xf32> -> vector<8x32xf32>
    %227 = vector.broadcast %11 : vector<1x32xf32> to vector<8x32xf32>
    %228 = arith.addf %226, %227 : vector<8x32xf32>
    %cst_102 = arith.constant dense<0.000000e+00> : vector<8x64xf32>
    %229 = tpu.matmul %221, %3, %cst_102 {dimension_numbers = #tpu.dot_dimension_numbers<[1], [0], [0], [1], [0, 0, 1, 1], [], []>} : vector<8x32xbf16>, vector<32x64xbf16>, vector<8x64xf32> -> vector<8x64xf32>
    %230 = vector.broadcast %13 : vector<1x64xf32> to vector<8x64xf32>
    %231 = arith.addf %229, %230 : vector<8x64xf32>
    %232 = vector.extract_strided_slice %231 {offsets = [0, 0], sizes = [8, 32], strides = [1, 1]} : vector<8x64xf32> to vector<8x32xf32>
    %233 = vector.extract_strided_slice %231 {offsets = [0, 32], sizes = [8, 32], strides = [1, 1]} : vector<8x64xf32> to vector<8x32xf32>
    %234 = vector.extract_strided_slice %228 {offsets = [0, 0], sizes = [8, 8], strides = [1, 1]} : vector<8x32xf32> to vector<8x8xf32>
    %235 = arith.truncf %234 : vector<8x8xf32> to vector<8x8xbf16>
    %236 = vector.extract_strided_slice %232 {offsets = [0, 0], sizes = [8, 8], strides = [1, 1]} : vector<8x32xf32> to vector<8x8xf32>
    %237 = arith.truncf %236 : vector<8x8xf32> to vector<8x8xbf16>
    %238 = vector.extract_strided_slice %233 {offsets = [0, 0], sizes = [8, 8], strides = [1, 1]} : vector<8x32xf32> to vector<8x8xf32>
    %239 = arith.truncf %238 : vector<8x8xf32> to vector<8x8xbf16>
    %cst_103 = arith.constant dense<0.000000e+00> : vector<8x8xf32>
    %240 = tpu.matmul %235, %237, %cst_103 {dimension_numbers = #tpu.dot_dimension_numbers<[1], [1], [0], [0], [0, 0, 1, 0], [], []>} : vector<8x8xbf16>, vector<8x8xbf16>, vector<8x8xf32> -> vector<8x8xf32>
    %cst_104 = arith.constant 0.353553385 : f32
    %241 = vector.broadcast %cst_104 : f32 to vector<8x8xf32>
    %242 = arith.mulf %240, %241 : vector<8x8xf32>
    %243 = vector.broadcast %224 : vector<1x8xf32> to vector<8x8xf32>
    %244 = arith.addf %242, %243 : vector<8x8xf32>
    %cst_105 = arith.constant dense<0xFF800000> : vector<8xf32>
    %245 = vector.multi_reduction <maximumf>, %244, %cst_105 [1] : vector<8x8xf32> to vector<8xf32>
    %246 = vector.shape_cast %245 : vector<8xf32> to vector<8x1xf32>
    %247 = vector.broadcast %246 : vector<8x1xf32> to vector<8x8xf32>
    %248 = arith.subf %244, %247 : vector<8x8xf32>
    %249 = math.exp %248 : vector<8x8xf32>
    %cst_106 = arith.constant dense<0.000000e+00> : vector<8xf32>
    %250 = vector.multi_reduction <add>, %249, %cst_106 [1] : vector<8x8xf32> to vector<8xf32>
    %251 = vector.shape_cast %250 : vector<8xf32> to vector<8x1xf32>
    %252 = tpu.reciprocal %251 {approx = true} : vector<8x1xf32> -> vector<8x1xf32>
    %253 = vector.broadcast %252 : vector<8x1xf32> to vector<8x8xf32>
    %254 = arith.mulf %249, %253 : vector<8x8xf32>
    %255 = arith.truncf %254 : vector<8x8xf32> to vector<8x8xbf16>
    %cst_107 = arith.constant dense<0.000000e+00> : vector<8x8xf32>
    %256 = tpu.matmul %255, %239, %cst_107 {dimension_numbers = #tpu.dot_dimension_numbers<[1], [0], [0], [1], [0, 0, 1, 1], [], []>} : vector<8x8xbf16>, vector<8x8xbf16>, vector<8x8xf32> -> vector<8x8xf32>
    %c0_108 = arith.constant 0 : index
    %c0_109 = arith.constant 0 : index
    %257 = vector.load %arg18[%c0_108, %c0_109] : memref<8x32xf32, #tpu.memory_space<vmem>>, vector<8x8xf32>
    tpu.vector_store %arg18[%c0_108, %c0_109], %256 {strides = array<i32>} : memref<8x32xf32, #tpu.memory_space<vmem>>, vector<8x8xf32>,
    %258 = vector.extract_strided_slice %228 {offsets = [0, 8], sizes = [8, 8], strides = [1, 1]} : vector<8x32xf32> to vector<8x8xf32>
    %259 = arith.truncf %258 : vector<8x8xf32> to vector<8x8xbf16>
    %260 = vector.extract_strided_slice %232 {offsets = [0, 8], sizes = [8, 8], strides = [1, 1]} : vector<8x32xf32> to vector<8x8xf32>
    %261 = arith.truncf %260 : vector<8x8xf32> to vector<8x8xbf16>
    %262 = vector.extract_strided_slice %233 {offsets = [0, 8], sizes = [8, 8], strides = [1, 1]} : vector<8x32xf32> to vector<8x8xf32>
    %263 = arith.truncf %262 : vector<8x8xf32> to vector<8x8xbf16>
    %cst_110 = arith.constant dense<0.000000e+00> : vector<8x8xf32>
    %264 = tpu.matmul %259, %261, %cst_110 {dimension_numbers = #tpu.dot_dimension_numbers<[1], [1], [0], [0], [0, 0, 1, 0], [], []>} : vector<8x8xbf16>, vector<8x8xbf16>, vector<8x8xf32> -> vector<8x8xf32>
    %cst_111 = arith.constant 0.353553385 : f32
    %265 = vector.broadcast %cst_111 : f32 to vector<8x8xf32>
    %266 = arith.mulf %264, %265 : vector<8x8xf32>
    %267 = vector.broadcast %224 : vector<1x8xf32> to vector<8x8xf32>
    %268 = arith.addf %266, %267 : vector<8x8xf32>
    %cst_112 = arith.constant dense<0xFF800000> : vector<8xf32>
    %269 = vector.multi_reduction <maximumf>, %268, %cst_112 [1] : vector<8x8xf32> to vector<8xf32>
    %270 = vector.shape_cast %269 : vector<8xf32> to vector<8x1xf32>
    %271 = vector.broadcast %270 : vector<8x1xf32> to vector<8x8xf32>
    %272 = arith.subf %268, %271 : vector<8x8xf32>
    %273 = math.exp %272 : vector<8x8xf32>
    %cst_113 = arith.constant dense<0.000000e+00> : vector<8xf32>
    %274 = vector.multi_reduction <add>, %273, %cst_113 [1] : vector<8x8xf32> to vector<8xf32>
    %275 = vector.shape_cast %274 : vector<8xf32> to vector<8x1xf32>
    %276 = tpu.reciprocal %275 {approx = true} : vector<8x1xf32> -> vector<8x1xf32>
    %277 = vector.broadcast %276 : vector<8x1xf32> to vector<8x8xf32>
    %278 = arith.mulf %273, %277 : vector<8x8xf32>
    %279 = arith.truncf %278 : vector<8x8xf32> to vector<8x8xbf16>
    %cst_114 = arith.constant dense<0.000000e+00> : vector<8x8xf32>
    %280 = tpu.matmul %279, %263, %cst_114 {dimension_numbers = #tpu.dot_dimension_numbers<[1], [0], [0], [1], [0, 0, 1, 1], [], []>} : vector<8x8xbf16>, vector<8x8xbf16>, vector<8x8xf32> -> vector<8x8xf32>
    %c0_115 = arith.constant 0 : index
    %c8_116 = arith.constant 8 : index
    %281 = vector.load %arg18[%c0_115, %c8_116] : memref<8x32xf32, #tpu.memory_space<vmem>>, vector<8x8xf32>
    tpu.vector_store %arg18[%c0_115, %c8_116], %280 {strides = array<i32>} : memref<8x32xf32, #tpu.memory_space<vmem>>, vector<8x8xf32>,
    %282 = vector.extract_strided_slice %228 {offsets = [0, 16], sizes = [8, 8], strides = [1, 1]} : vector<8x32xf32> to vector<8x8xf32>
    %283 = arith.truncf %282 : vector<8x8xf32> to vector<8x8xbf16>
    %284 = vector.extract_strided_slice %232 {offsets = [0, 16], sizes = [8, 8], strides = [1, 1]} : vector<8x32xf32> to vector<8x8xf32>
    %285 = arith.truncf %284 : vector<8x8xf32> to vector<8x8xbf16>
    %286 = vector.extract_strided_slice %233 {offsets = [0, 16], sizes = [8, 8], strides = [1, 1]} : vector<8x32xf32> to vector<8x8xf32>
    %287 = arith.truncf %286 : vector<8x8xf32> to vector<8x8xbf16>
    %cst_117 = arith.constant dense<0.000000e+00> : vector<8x8xf32>
    %288 = tpu.matmul %283, %285, %cst_117 {dimension_numbers = #tpu.dot_dimension_numbers<[1], [1], [0], [0], [0, 0, 1, 0], [], []>} : vector<8x8xbf16>, vector<8x8xbf16>, vector<8x8xf32> -> vector<8x8xf32>
    %cst_118 = arith.constant 0.353553385 : f32
    %289 = vector.broadcast %cst_118 : f32 to vector<8x8xf32>
    %290 = arith.mulf %288, %289 : vector<8x8xf32>
    %291 = vector.broadcast %224 : vector<1x8xf32> to vector<8x8xf32>
    %292 = arith.addf %290, %291 : vector<8x8xf32>
    %cst_119 = arith.constant dense<0xFF800000> : vector<8xf32>
    %293 = vector.multi_reduction <maximumf>, %292, %cst_119 [1] : vector<8x8xf32> to vector<8xf32>
    %294 = vector.shape_cast %293 : vector<8xf32> to vector<8x1xf32>
    %295 = vector.broadcast %294 : vector<8x1xf32> to vector<8x8xf32>
    %296 = arith.subf %292, %295 : vector<8x8xf32>
    %297 = math.exp %296 : vector<8x8xf32>
    %cst_120 = arith.constant dense<0.000000e+00> : vector<8xf32>
    %298 = vector.multi_reduction <add>, %297, %cst_120 [1] : vector<8x8xf32> to vector<8xf32>
    %299 = vector.shape_cast %298 : vector<8xf32> to vector<8x1xf32>
    %300 = tpu.reciprocal %299 {approx = true} : vector<8x1xf32> -> vector<8x1xf32>
    %301 = vector.broadcast %300 : vector<8x1xf32> to vector<8x8xf32>
    %302 = arith.mulf %297, %301 : vector<8x8xf32>
    %303 = arith.truncf %302 : vector<8x8xf32> to vector<8x8xbf16>
    %cst_121 = arith.constant dense<0.000000e+00> : vector<8x8xf32>
    %304 = tpu.matmul %303, %287, %cst_121 {dimension_numbers = #tpu.dot_dimension_numbers<[1], [0], [0], [1], [0, 0, 1, 1], [], []>} : vector<8x8xbf16>, vector<8x8xbf16>, vector<8x8xf32> -> vector<8x8xf32>
    %c0_122 = arith.constant 0 : index
    %c16_123 = arith.constant 16 : index
    %305 = vector.load %arg18[%c0_122, %c16_123] : memref<8x32xf32, #tpu.memory_space<vmem>>, vector<8x8xf32>
    tpu.vector_store %arg18[%c0_122, %c16_123], %304 {strides = array<i32>} : memref<8x32xf32, #tpu.memory_space<vmem>>, vector<8x8xf32>,
    %306 = vector.extract_strided_slice %228 {offsets = [0, 24], sizes = [8, 8], strides = [1, 1]} : vector<8x32xf32> to vector<8x8xf32>
    %307 = arith.truncf %306 : vector<8x8xf32> to vector<8x8xbf16>
    %308 = vector.extract_strided_slice %232 {offsets = [0, 24], sizes = [8, 8], strides = [1, 1]} : vector<8x32xf32> to vector<8x8xf32>
    %309 = arith.truncf %308 : vector<8x8xf32> to vector<8x8xbf16>
    %310 = vector.extract_strided_slice %233 {offsets = [0, 24], sizes = [8, 8], strides = [1, 1]} : vector<8x32xf32> to vector<8x8xf32>
    %311 = arith.truncf %310 : vector<8x8xf32> to vector<8x8xbf16>
    %cst_124 = arith.constant dense<0.000000e+00> : vector<8x8xf32>
    %312 = tpu.matmul %307, %309, %cst_124 {dimension_numbers = #tpu.dot_dimension_numbers<[1], [1], [0], [0], [0, 0, 1, 0], [], []>} : vector<8x8xbf16>, vector<8x8xbf16>, vector<8x8xf32> -> vector<8x8xf32>
    %cst_125 = arith.constant 0.353553385 : f32
    %313 = vector.broadcast %cst_125 : f32 to vector<8x8xf32>
    %314 = arith.mulf %312, %313 : vector<8x8xf32>
    %315 = vector.broadcast %224 : vector<1x8xf32> to vector<8x8xf32>
    %316 = arith.addf %314, %315 : vector<8x8xf32>
    %cst_126 = arith.constant dense<0xFF800000> : vector<8xf32>
    %317 = vector.multi_reduction <maximumf>, %316, %cst_126 [1] : vector<8x8xf32> to vector<8xf32>
    %318 = vector.shape_cast %317 : vector<8xf32> to vector<8x1xf32>
    %319 = vector.broadcast %318 : vector<8x1xf32> to vector<8x8xf32>
    %320 = arith.subf %316, %319 : vector<8x8xf32>
    %321 = math.exp %320 : vector<8x8xf32>
    %cst_127 = arith.constant dense<0.000000e+00> : vector<8xf32>
    %322 = vector.multi_reduction <add>, %321, %cst_127 [1] : vector<8x8xf32> to vector<8xf32>
    %323 = vector.shape_cast %322 : vector<8xf32> to vector<8x1xf32>
    %324 = tpu.reciprocal %323 {approx = true} : vector<8x1xf32> -> vector<8x1xf32>
    %325 = vector.broadcast %324 : vector<8x1xf32> to vector<8x8xf32>
    %326 = arith.mulf %321, %325 : vector<8x8xf32>
    %327 = arith.truncf %326 : vector<8x8xf32> to vector<8x8xbf16>
    %cst_128 = arith.constant dense<0.000000e+00> : vector<8x8xf32>
    %328 = tpu.matmul %327, %311, %cst_128 {dimension_numbers = #tpu.dot_dimension_numbers<[1], [0], [0], [1], [0, 0, 1, 1], [], []>} : vector<8x8xbf16>, vector<8x8xbf16>, vector<8x8xf32> -> vector<8x8xf32>
    %c0_129 = arith.constant 0 : index
    %c24_130 = arith.constant 24 : index
    %329 = vector.load %arg18[%c0_129, %c24_130] : memref<8x32xf32, #tpu.memory_space<vmem>>, vector<8x8xf32>
    tpu.vector_store %arg18[%c0_129, %c24_130], %328 {strides = array<i32>} : memref<8x32xf32, #tpu.memory_space<vmem>>, vector<8x8xf32>,
    %c0_131 = arith.constant 0 : index
    %c0_132 = arith.constant 0 : index
    %330 = vector.load %arg18[%c0_131, %c0_132] : memref<8x32xf32, #tpu.memory_space<vmem>>, vector<8x32xf32>
    %331 = arith.truncf %330 : vector<8x32xf32> to vector<8x32xbf16>
    %cst_133 = arith.constant dense<0.000000e+00> : vector<8x32xf32>
    %332 = tpu.matmul %331, %5, %cst_133 {dimension_numbers = #tpu.dot_dimension_numbers<[1], [0], [0], [1], [0, 0, 1, 1], [], []>} : vector<8x32xbf16>, vector<32x32xbf16>, vector<8x32xf32> -> vector<8x32xf32>
    %333 = vector.broadcast %15 : vector<1x32xf32> to vector<8x32xf32>
    %334 = arith.addf %332, %333 : vector<8x32xf32>
    %335 = arith.addf %334, %217 : vector<8x32xf32>
    %336 = vector.extract_strided_slice %21 {offsets = [0, 0], sizes = [1, 32], strides = [1, 1]} : vector<2x32xf32> to vector<1x32xf32>
    %337 = vector.extract_strided_slice %21 {offsets = [1, 0], sizes = [1, 32], strides = [1, 1]} : vector<2x32xf32> to vector<1x32xf32>
    %cst_134 = arith.constant dense<0.000000e+00> : vector<8xf32>
    %338 = vector.multi_reduction <add>, %335, %cst_134 [1] : vector<8x32xf32> to vector<8xf32>
    %339 = vector.shape_cast %338 : vector<8xf32> to vector<8x1xf32>
    %cst_135 = arith.constant 3.200000e+01 : f32
    %340 = vector.broadcast %cst_135 : f32 to vector<8x1xf32>
    %341 = arith.divf %339, %340 : vector<8x1xf32>
    %342 = vector.broadcast %341 : vector<8x1xf32> to vector<8x32xf32>
    %343 = arith.subf %335, %342 : vector<8x32xf32>
    %344 = arith.mulf %343, %343 : vector<8x32xf32>
    %cst_136 = arith.constant dense<0.000000e+00> : vector<8xf32>
    %345 = vector.multi_reduction <add>, %344, %cst_136 [1] : vector<8x32xf32> to vector<8xf32>
    %346 = vector.shape_cast %345 : vector<8xf32> to vector<8x1xf32>
    %cst_137 = arith.constant 3.200000e+01 : f32
    %347 = vector.broadcast %cst_137 : f32 to vector<8x1xf32>
    %348 = arith.divf %346, %347 : vector<8x1xf32>
    %cst_138 = arith.constant 9.99999996E-13 : f32
    %349 = vector.broadcast %cst_138 : f32 to vector<8x1xf32>
    %350 = arith.addf %348, %349 : vector<8x1xf32>
    %351 = math.rsqrt %350 : vector<8x1xf32>
    %352 = vector.broadcast %351 : vector<8x1xf32> to vector<8x32xf32>
    %353 = arith.mulf %343, %352 : vector<8x32xf32>
    %354 = vector.broadcast %336 : vector<1x32xf32> to vector<8x32xf32>
    %355 = arith.mulf %353, %354 : vector<8x32xf32>
    %356 = vector.broadcast %337 : vector<1x32xf32> to vector<8x32xf32>
    %357 = arith.addf %355, %356 : vector<8x32xf32>
    %358 = arith.truncf %357 : vector<8x32xf32> to vector<8x32xbf16>
    %cst_139 = arith.constant dense<0.000000e+00> : vector<8x128xf32>
    %359 = tpu.matmul %358, %7, %cst_139 {dimension_numbers = #tpu.dot_dimension_numbers<[1], [0], [0], [1], [0, 0, 1, 1], [], []>} : vector<8x32xbf16>, vector<32x128xbf16>, vector<8x128xf32> -> vector<8x128xf32>
    %360 = vector.broadcast %17 : vector<1x128xf32> to vector<8x128xf32>
    %361 = arith.addf %359, %360 : vector<8x128xf32>
    %cst_140 = arith.constant 5.000000e-01 : f32
    %362 = vector.broadcast %cst_140 : f32 to vector<8x128xf32>
    %363 = arith.mulf %362, %361 : vector<8x128xf32>
    %cst_141 = arith.constant 4.471500e-02 : f32
    %364 = vector.broadcast %cst_141 : f32 to vector<8x128xf32>
    %365 = arith.mulf %364, %361 : vector<8x128xf32>
    %366 = arith.mulf %365, %361 : vector<8x128xf32>
    %367 = arith.mulf %366, %361 : vector<8x128xf32>
    %368 = arith.addf %361, %367 : vector<8x128xf32>
    %cst_142 = arith.constant 0.797884583 : f32
    %369 = vector.broadcast %cst_142 : f32 to vector<8x128xf32>
    %370 = arith.mulf %369, %368 : vector<8x128xf32>
    %371 = math.tanh %370 : vector<8x128xf32>
    %cst_143 = arith.constant 1.000000e+00 : f32
    %372 = vector.broadcast %cst_143 : f32 to vector<8x128xf32>
    %373 = arith.addf %372, %371 : vector<8x128xf32>
    %374 = arith.mulf %363, %373 : vector<8x128xf32>
    %375 = arith.truncf %374 : vector<8x128xf32> to vector<8x128xbf16>
    %cst_144 = arith.constant dense<0.000000e+00> : vector<8x32xf32>
    %376 = tpu.matmul %375, %9, %cst_144 {dimension_numbers = #tpu.dot_dimension_numbers<[1], [0], [0], [1], [0, 0, 1, 1], [], []>} : vector<8x128xbf16>, vector<128x32xbf16>, vector<8x32xf32> -> vector<8x32xf32>
    %377 = vector.broadcast %19 : vector<1x32xf32> to vector<8x32xf32>
    %378 = arith.addf %376, %377 : vector<8x32xf32>
    %379 = arith.addf %378, %357 : vector<8x32xf32>
    %380 = vector.extract_strided_slice %23 {offsets = [0, 0], sizes = [1, 32], strides = [1, 1]} : vector<2x32xf32> to vector<1x32xf32>
    %381 = vector.extract_strided_slice %23 {offsets = [1, 0], sizes = [1, 32], strides = [1, 1]} : vector<2x32xf32> to vector<1x32xf32>
    %cst_145 = arith.constant dense<0.000000e+00> : vector<8xf32>
    %382 = vector.multi_reduction <add>, %379, %cst_145 [1] : vector<8x32xf32> to vector<8xf32>
    %383 = vector.shape_cast %382 : vector<8xf32> to vector<8x1xf32>
    %cst_146 = arith.constant 3.200000e+01 : f32
    %384 = vector.broadcast %cst_146 : f32 to vector<8x1xf32>
    %385 = arith.divf %383, %384 : vector<8x1xf32>
    %386 = vector.broadcast %385 : vector<8x1xf32> to vector<8x32xf32>
    %387 = arith.subf %379, %386 : vector<8x32xf32>
    %388 = arith.mulf %387, %387 : vector<8x32xf32>
    %cst_147 = arith.constant dense<0.000000e+00> : vector<8xf32>
    %389 = vector.multi_reduction <add>, %388, %cst_147 [1] : vector<8x32xf32> to vector<8xf32>
    %390 = vector.shape_cast %389 : vector<8xf32> to vector<8x1xf32>
    %cst_148 = arith.constant 3.200000e+01 : f32
    %391 = vector.broadcast %cst_148 : f32 to vector<8x1xf32>
    %392 = arith.divf %390, %391 : vector<8x1xf32>
    %cst_149 = arith.constant 9.99999996E-13 : f32
    %393 = vector.broadcast %cst_149 : f32 to vector<8x1xf32>
    %394 = arith.addf %392, %393 : vector<8x1xf32>
    %395 = math.rsqrt %394 : vector<8x1xf32>
    %396 = vector.broadcast %395 : vector<8x1xf32> to vector<8x32xf32>
    %397 = arith.mulf %387, %396 : vector<8x32xf32>
    %398 = vector.broadcast %380 : vector<1x32xf32> to vector<8x32xf32>
    %399 = arith.mulf %397, %398 : vector<8x32xf32>
    %400 = vector.broadcast %381 : vector<1x32xf32> to vector<8x32xf32>
    %401 = arith.addf %399, %400 : vector<8x32xf32>
    %c0_150 = arith.constant 0 : index
    %402 = arith.index_cast %c1_i32 : i32 to index
    %c0_151 = arith.constant 0 : index
    %c0_152 = arith.constant 0 : index
    %403 = vector.load %arg17[%c0_150, %402, %c0_151, %c0_152] : memref<1x2x8x32xf32, #tpu.memory_space<vmem>>, vector<1x1x8x32xf32>
    %404 = vector.shape_cast %403 : vector<1x1x8x32xf32> to vector<8x32xf32>
    %405 = vector.shape_cast %401 : vector<8x32xf32> to vector<1x1x8x32xf32>
    tpu.vector_store %arg17[%c0_150, %402, %c0_151, %c0_152], %405 {strides = array<i32>} : memref<1x2x8x32xf32, #tpu.memory_space<vmem>>, vector<1x1x8x32xf32>,
    %c2_i32 = arith.constant 2 : i32
    return
  }
  func.func @transform_0(%arg0: i32, %arg1: i32) -> (i32, i32, i32, i32) {
    %c0_i32 = arith.constant 0 : i32
    %c0_i32_0 = arith.constant 0 : i32
    %c0_i32_1 = arith.constant 0 : i32
    return %arg0, %arg1, %c0_i32, %c0_i32_0 : i32, i32, i32, i32
  }
  func.func @transform_1(%arg0: i32, %arg1: i32) -> (i32, i32, i32, i32) {
    %c0_i32 = arith.constant 0 : i32
    %c0_i32_0 = arith.constant 0 : i32
    %c0_i32_1 = arith.constant 0 : i32
    return %arg0, %arg1, %c0_i32, %c0_i32_0 : i32, i32, i32, i32
  }
  func.func @transform_2(%arg0: i32, %arg1: i32) -> (i32, i32, i32, i32) {
    %c0_i32 = arith.constant 0 : i32
    %c0_i32_0 = arith.constant 0 : i32
    %c0_i32_1 = arith.constant 0 : i32
    return %arg0, %arg1, %c0_i32, %c0_i32_0 : i32, i32, i32, i32
  }
  func.func @transform_3(%arg0: i32, %arg1: i32) -> (i32, i32, i32) {
    %c0_i32 = arith.constant 0 : i32
    %c0_i32_0 = arith.constant 0 : i32
    %c0_i32_1 = arith.constant 0 : i32
    return %arg0, %c0_i32, %c0_i32_0 : i32, i32, i32
  }
  func.func @transform_4(%arg0: i32, %arg1: i32) -> (i32, i32, i32) {
    %c0_i32 = arith.constant 0 : i32
    %c0_i32_0 = arith.constant 0 : i32
    %c0_i32_1 = arith.constant 0 : i32
    return %arg0, %c0_i32, %c0_i32_0 : i32, i32, i32
  }
  func.func @transform_5(%arg0: i32, %arg1: i32) -> (i32, i32, i32) {
    %c0_i32 = arith.constant 0 : i32
    %c0_i32_0 = arith.constant 0 : i32
    %c0_i32_1 = arith.constant 0 : i32
    return %arg0, %c0_i32, %c0_i32_0 : i32, i32, i32
  }
  func.func @transform_6(%arg0: i32, %arg1: i32) -> (i32, i32, i32) {
    %c0_i32 = arith.constant 0 : i32
    %c0_i32_0 = arith.constant 0 : i32
    %c0_i32_1 = arith.constant 0 : i32
    return %arg0, %c0_i32, %c0_i32_0 : i32, i32, i32
  }
  func.func @transform_7(%arg0: i32, %arg1: i32) -> (i32, i32, i32) {
    %c0_i32 = arith.constant 0 : i32
    %c0_i32_0 = arith.constant 0 : i32
    %c0_i32_1 = arith.constant 0 : i32
    return %arg0, %c0_i32, %c0_i32_0 : i32, i32, i32
  }
  func.func @transform_8(%arg0: i32, %arg1: i32) -> (i32, i32, i32) {
    %c0_i32 = arith.constant 0 : i32
    %c0_i32_0 = arith.constant 0 : i32
    %c0_i32_1 = arith.constant 0 : i32
    return %arg0, %c0_i32, %c0_i32_0 : i32, i32, i32
  }
  func.func @transform_9(%arg0: i32, %arg1: i32) -> (i32, i32, i32) {
    %c0_i32 = arith.constant 0 : i32
    %c0_i32_0 = arith.constant 0 : i32
    %c0_i32_1 = arith.constant 0 : i32
    return %arg0, %c0_i32, %c0_i32_0 : i32, i32, i32
  }
  func.func @transform_10(%arg0: i32, %arg1: i32) -> (i32, i32, i32) {
    %c0_i32 = arith.constant 0 : i32
    %c0_i32_0 = arith.constant 0 : i32
    %c0_i32_1 = arith.constant 0 : i32
    return %arg0, %c0_i32, %c0_i32_0 : i32, i32, i32
  }
  func.func @transform_11(%arg0: i32, %arg1: i32) -> (i32, i32, i32) {
    %c0_i32 = arith.constant 0 : i32
    %c0_i32_0 = arith.constant 0 : i32
    %c0_i32_1 = arith.constant 0 : i32
    return %arg0, %c0_i32, %c0_i32_0 : i32, i32, i32
  }
  func.func @transform_12(%arg0: i32, %arg1: i32) -> (i32, i32, i32) {
    %c0_i32 = arith.constant 0 : i32
    %c0_i32_0 = arith.constant 0 : i32
    %c0_i32_1 = arith.constant 0 : i32
    return %arg0, %c0_i32, %c0_i32_0 : i32, i32, i32
  }
  func.func @transform_13(%arg0: i32, %arg1: i32) -> (i32, i32, i32) {
    %c0_i32 = arith.constant 0 : i32
    %c0_i32_0 = arith.constant 0 : i32
    %c0_i32_1 = arith.constant 0 : i32
    return %arg0, %c0_i32, %c0_i32_0 : i32, i32, i32
  }
  func.func @transform_14(%arg0: i32, %arg1: i32) -> (i32, i32, i32) {
    %c0_i32 = arith.constant 0 : i32
    %c0_i32_0 = arith.constant 0 : i32
    %c0_i32_1 = arith.constant 0 : i32
    return %arg0, %c0_i32, %c0_i32_0 : i32, i32, i32
  }
  func.func @transform_15(%arg0: i32, %arg1: i32) -> (i32, i32, i32, i32) {
    %c0_i32 = arith.constant 0 : i32
    %c0_i32_0 = arith.constant 0 : i32
    %c0_i32_1 = arith.constant 0 : i32
    return %arg0, %arg1, %c0_i32, %c0_i32_0 : i32, i32, i32, i32
  }
}

</mosaic_0001>

<bundles_post_ra>
// kernel: tpu_custom_call.1
= control target key start
LH: loop header
LB: loop body
LE: loop exit
PB: predicated region body
PF: predicated region fallthrough
CT: control target
= control target key end

     0   :  { %7 = vsyncpa [#allocation3], 0  ;;  %s719_s0 = inlined_call_operand.hbm [shape: f32[16,128], index: 0, kind: input, shape index: {}]   ;;  %s720_s1 = inlined_call_operand.hbm [shape: f32[16,128], index: 1, kind: input, shape index: {}]   ;;  %s721_s2 = inlined_call_operand.hbm [shape: f32[16,128], index: 2, kind: output, shape index: {}]  }
   0x1   :  { %9 = vsyncpa [#allocation3 + $0x1], 0 }
   0x2   :  { %10 = vsyncpa [#allocation6], 0 }
   0x3   :  { %11 = vsyncpa [#allocation4], 0 }
   0x4   :  { %13 = vsyncpa [#allocation4 + $0x1], 0  ;;  %s495_s9 = smov 0   ;;  %s497_s10 = smov 0  }
   0x5   :  { %s499_s11 = smov 0   ;;  %s501_s12 = smov 0  }
   0x6 LB: > { %s516_s13 = sadd.s32 4294967295, %s475_s12   ;;  %s279_s14 = sadd.s32 4294967294, %s475_s12   ;;  %s475_s12 = sphi %s501_s12, %s743_s12   ;;  %s471_s11 = sphi %s499_s11, %s742_s11   ;;  %s467_s10 = sphi %s497_s10, %s741_s10   ;;  %s463_s9 = sphi %s495_s9, %s740_s9  }
   0x7   : > { %s520_s15 = sadd.s32 1, %s475_s12   ;;  %s26_s16 = sadd.s32 1, %s471_s11 }
   0x8   : > { %s23_s17 = ssub.s32 %s475_s12, %s520_s15  ;;  %p33_p0 = scmp.ne.s32.totalorder %s471_s11, %s467_s10 }
   0x9   : > { %p24_p1 = scmp.eq.s32.totalorder %s23_s17, 0  ;;  %p39_p2 = scmp.ne.s32.totalorder %s467_s10, %s463_s9 }
   0xa   : > { %p40_p3 = scmp.eq.s32.totalorder %s516_s13, 0  ;;  %p89_p4 = scmp.eq.s32.totalorder %s516_s13, 1 }
   0xb   : > { %s532_s18 = scalar_select %p24_p1, %s471_s11, %s26_s16  }
   0xc   : > { %p534_p5 = por %p40_p3, %p39_p2  ;;  %p541_p6 = por %p89_p4, %p33_p0 }
   0xd   : > { %p95_p7 = scmp.eq.s32.totalorder %s279_s14, 1  ;;  %p280_p8 = scmp.ge.s32.totalorder %s475_s12, 1 }
   0xe   : > { %s726_s19 = scalar_select %p534_p5, 1, 0 }
   0xf   : > { %s727_s20 = scalar_select %p541_p6, 1, 0 }
  0x10   : > { %p102_p9 = scmp.lt.s32.totalorder %s475_s12, 3  ;;  %s281_s21 = sshll.u32 %s516_s13, 7 }
  0x11   : > { %p548_p10 = por %p95_p7, %p39_p2  ;;  %s557_s25 = scalar_lea.hbm %s720_s1, %s281_s21 }
  0x12   : > { %p559_p11 = pnand %p280_p8, %p102_p9  ;;  %s477_s27 = smov [#allocation5]  }
  0x13   : > { %s728_s22 = scalar_select %p548_p10, 1, 0 }
  0x14   : > { %s729_s26 = scalar_select %p559_p11, 1, 0 }
  0x15   : > { %s117_s28 = sshll.u32 %s477_s27, 4  ;;  %p298_p13 = pneg %p559_p11  ;;  %s566_s28 = int_to_ptr.vmem [resolvable:$true] %s117_s28 }
  0x16   : > { %p34_p1 = scmp.eq.s32.totalorder %s475_s12, 0  ;;  %s128_s30 = sand.u32 1, %s471_s11  }
  0x17   : > { %p572_p3 = pnand %p298_p13, %p534_p5  ;;  %s283_s4 = sshll.u32 %s128_s30, 3 }
  0x18   : > { %p580_p4 = por %p34_p1, %p33_p0  ;;  %s345_s5 = scalar_lea.hbm %s557_s25, 128 }
  0x19   : > { %p346_p7 = scmp.ne.s32.totalorder %s557_s25, %s345_s5  ;;  %p347_p8 = pneg %p572_p3 }
  0x1a   : > { %s731_s3 = scalar_select %p580_p4, 1, 0 }
  0x1b   : > { %p348_p9 = pnand %p347_p8, %p346_p7  ;;  %s350_s8 = scalar_lea.hbm %s720_s1, 256 }
  0x1c   : > { %p351_p0 = scmp.lt.u32.totalorder %s557_s25, %s720_s1  ;;  %p352_p1 = scmp.lt.u32.totalorder %s350_s8, %s345_s5 }
  0x1d   : > { %p349_p13 = pneg %p348_p9  ;;  %p354_p2 = scmp.lt.u32.totalorder %s345_s5, %s557_s25 }
  0x1e   : > { %p353_p12 = por %p352_p1, %p351_p0 }
  0x20   : > { %p355_p10 = por %p354_p2, %p353_p12 }
  0x22   : > { %p356_p6 = pnand %p355_p10, %p349_p13 }
  0x24   : > { %359 = shalt.err (!%p356_p6)
}
  0x25   : > { %s360_s17 = scalar_lea.vmem %s566_s28, 128  ;;  %p368_p11 = scmp.lt.s32.totalorder %s566_s28, %s566_s28 }
  0x26   : > { %p361_p7 = scmp.ne.s32.totalorder %s566_s28, %s360_s17  ;;  %p369_p4 = scmp.lt.s32.totalorder %s360_s17, %s360_s17 }
  0x28   : > { %p363_p9 = pnand %p361_p7, %p347_p8  ;;  %p370_p0 = por %p369_p4, %p368_p11 }
  0x2a   : > { %p364_p5 = pneg %p363_p9 }
  0x2c   : > { %p371_p1 = pnand %p370_p0, %p364_p5 }
  0x2e   : > { %374 = shalt.err (!%p371_p1)
}
  0x2f   : > { %301 = dma.hbm_to_vmem [thread:$0]  (!%p572_p3), %s557_s25, 128, %s566_s28, [#allocation6]  }
  0x30   : > { %s284_s23 = sshll.u32 %s475_s12, 7  ;;  %s132_s6 = scalar_lea.vmem [#allocation2], %s283_s4 }
  0x31   : > { %s616_s5 = scalar_lea.hbm %s719_s0, %s284_s23  ;;  %s139_s7 = sshll.u32 %s132_s6, 4  ;;  %s618_s7 = int_to_ptr.vmem [resolvable:$true] %s139_s7 }
  0x32   : > { %p732_p5 = scmp.ne.s32.totalorder %s731_s3, 0  ;;  %p733_p6 = scmp.lt.s32.totalorder %s475_s12, 2 }
  0x33   : > { %s129_s25 = scalar_lea.sflag [#allocation3], %s128_s30  ;;  %s375_s28 = scalar_lea.hbm %s616_s5, 128 }
  0x34   : > { %p624_p10 = pnand %p733_p6, %p732_p5  ;;  %p376_p11 = scmp.ne.s32.totalorder %s616_s5, %s375_s28 }
  0x35   : > { %s380_s3 = scalar_lea.hbm %s719_s0, 256  ;;  %p381_p4 = scmp.lt.u32.totalorder %s616_s5, %s719_s0 }
  0x36   : > { %p377_p12 = pneg %p624_p10  ;;  %p382_p8 = scmp.lt.u32.totalorder %s380_s3, %s375_s28 }
  0x37   : > { %p384_p7 = scmp.lt.u32.totalorder %s375_s28, %s616_s5 }
  0x38   : > { %p378_p2 = pnand %p377_p12, %p376_p11  ;;  %p383_p13 = por %p382_p8, %p381_p4 }
  0x3a   : > { %p379_p3 = pneg %p378_p2  ;;  %p385_p9 = por %p384_p7, %p383_p13 }
  0x3c   : > { %p386_p0 = pnand %p385_p9, %p379_p3 }
  0x3e   : > { %389 = shalt.err (!%p386_p0)
}
  0x3f   : > { %s390_s30 = scalar_lea.vmem %s618_s7, 128  ;;  %s478_s17 = smov [#allocation2]  }
  0x40   : > { %p391_p1 = scmp.ne.s32.totalorder %s618_s7, %s390_s30  ;;  %s395_s23 = sshll.u32 %s478_s17, 4  ;;  %s396_s23 = int_to_ptr.vmem [resolvable:$false] %s395_s23 }
  0x41   : > { %s397_s24 = scalar_lea.vmem %s396_s23, 256  ;;  %p398_p11 = scmp.lt.s32.totalorder %s618_s7, %s396_s23 }
  0x42   : > { %p393_p5 = pnand %p391_p1, %p377_p12  ;;  %p399_p2 = scmp.lt.s32.totalorder %s397_s24, %s390_s30 }
  0x44   : > { %p394_p6 = pneg %p393_p5  ;;  %p400_p4 = por %p399_p2, %p398_p11 }
  0x46   : > { %p401_p8 = pnand %p400_p4, %p394_p6 }
  0x48   : > { %404 = shalt.err (!%p401_p8)
}
  0x49   : > { %305 = dma.hbm_to_vmem [thread:$0]  (!%p624_p10), %s616_s5, 128, %s618_s7, %s129_s25  }
  0x4a   : > { %p735_p3 = scmp.ne.s32.totalorder %s729_s26, 0 }
  0x4b   : > { %s658_s27 = sand.u32 (!%p735_p3), 1, %s467_s10   ;;  %p736_p12 = scmp.ne.s32.totalorder (!%p735_p3), %s726_s19, 0 }
  0x4c   : > { %148 = sbr.rel (%p735_p3) target bundleno = 111 (0x6f), region = 28  ;;  %s286_s6 = sshll.u32 (!%p735_p3), %s658_s27, 3 }
  0x4d   : > { %s151_s28 = scalar_lea.sflag (!%p735_p3), [#allocation3], %s658_s27  ;;  %s154_s4 = scalar_lea.vmem (!%p735_p3), [#allocation2], %s286_s6 }
  0x53   : > { %450 = dma.done.wait (%p736_p12), %s151_s28, 128  }
  0x54   : > { %452 = vsyncadd (%p736_p12), %s151_s28, 4294967168 }
  0x55   : > { %454 = dma.done.wait (%p736_p12), [#allocation6], 128  }
  0x56   : > { %456 = vsyncadd (%p736_p12), [#allocation6], 4294967168  ;;  %s178_s26 = scalar_lea.vmem [#allocation7], %s286_s6  ;;  %v179_v0 = vld [vmem:[%s154_s4] sm:$0xff]  ;;  %v180_v1 = vld [vmem:[#allocation5] sm:$0xff]  ;;  %s677_s25 = scalar_lea.hbm %s721_s2, %s281_s21 }
  0x57   : > { %s197_s5 = sshll.u32 %s178_s26, 4  ;;  %v181_v2 = vadd.f32 %v180_v1, %v179_v0  ;;  %s184_s19 = scalar_lea.sflag [#allocation4], %s658_s27  ;;  %s670_s5 = int_to_ptr.vmem [resolvable:$true] %s197_s5 }
  0x58   : > { %s405_s8 = scalar_lea.vmem %s670_s5, 128  ;;  %p737_p13 = scmp.ne.s32.totalorder %s727_s20, 0 }
  0x59   : > { %182 = vst [vmem:[%s178_s26] sm:$0xff] %v181_v2  ;;  %p406_p10 = scmp.ne.s32.totalorder %s670_s5, %s405_s8  ;;  %s479_s3 = smov [#allocation7]  }
  0x5a   : > { %s409_s14 = sshll.u32 %s479_s3, 4  ;;  %s410_s14 = int_to_ptr.vmem [resolvable:$false] %s409_s14 }
  0x5b   : > { %p407_p7 = pnand %p406_p10, %p737_p13  ;;  %s411_s16 = scalar_lea.vmem %s410_s14, 256 }
  0x5c   : > { %p412_p0 = scmp.lt.s32.totalorder %s670_s5, %s410_s14  ;;  %p413_p1 = scmp.lt.s32.totalorder %s411_s16, %s405_s8 }
  0x5d   : > { %p408_p9 = pneg %p407_p7 }
  0x5e   : > { %p414_p5 = por %p413_p1, %p412_p0 }
  0x60   : > { %p415_p6 = pnand %p414_p5, %p408_p9 }
  0x62   : > { %418 = shalt.err (!%p415_p6)
}
  0x63   : > { %s419_s13 = scalar_lea.hbm %s677_s25, 128  ;;  %s423_s17 = scalar_lea.hbm %s721_s2, 256 }
  0x64   : > { %p420_p11 = scmp.ne.s32.totalorder %s677_s25, %s419_s13  ;;  %p424_p8 = scmp.lt.u32.totalorder %s677_s25, %s721_s2 }
  0x65   : > { %p425_p3 = scmp.lt.u32.totalorder %s423_s17, %s419_s13  ;;  %p427_p10 = scmp.lt.u32.totalorder %s419_s13, %s677_s25 }
  0x66   : > { %p421_p2 = pnand %p420_p11, %p737_p13 }
  0x67   : > { %p426_p12 = por %p425_p3, %p424_p8 }
  0x68   : > { %p422_p4 = pneg %p421_p2 }
  0x69   : > { %p428_p7 = por %p427_p10, %p426_p12 }
  0x6b   : > { %p429_p9 = pnand %p428_p7, %p422_p4 }
  0x6d   : > { %432 = shalt.err (!%p429_p9)
}
  0x6e   : > { %296 = dma.vmem_to_hbm [thread:$0]  (%p737_p13), %s670_s5, 128, %s677_s25, %s184_s19  }
  0x6f PF: > { %s209_s27 = sand.u32 1, %s463_s9   ;;  %p738_p0 = scmp.ne.s32.totalorder %s728_s22, 0 }
  0x70   : > { %p739_p1 = scmp.ge.s32.totalorder %s475_s12, 2  ;;  %s210_s6 = scalar_lea.sflag [#allocation4], %s209_s27 }
  0x72   : > { %p307_p5 = pnand %p739_p1, %p738_p0 }
  0x74   : > { %458 = dma.done.wait (!%p307_p5), %s210_s6, 128  }
  0x75   : > { %460 = vsyncadd (!%p307_p5), %s210_s6, 4294967168  ;;  %p16_p6 = scmp.ge.s32.totalorder %s520_s15, 4   ;;  %s740_s9 = smov %s467_s10 }
  0x76   : > { %s741_s10 = smov %s471_s11  ;;  %s742_s11 = smov %s532_s18 }
  0x77   : > { %s743_s12 = smov %s520_s15  ;;  %18 = sbr.rel (!%p16_p6) target bundleno = 6 (0x6), region = 78 }
  0x7e   :  { %215 = vsyncpa [#allocation3], 1 }
  0x7f   :  { %217 = vsyncpa [#allocation3 + $0x1], 1 }
  0x80   :  { %218 = vsyncpa [#allocation6], 1 }
  0x81   :  { %219 = vsyncpa [#allocation4], 1 }
  0x82   :  { %221 = vsyncpa [#allocation4 + $0x1], 1 }

// kernel: sdif_forward.4
= control target key start
LH: loop header
LB: loop body
LE: loop exit
PB: predicated region body
PF: predicated region fallthrough
CT: control target
= control target key end

     0   :  { %v112_v0 = vmov 0.0   ;;  %vm41_vm0 = vcmask 1041408   ;;  %vm113_vm1 = vmmov 0   ;;  %vm37_vm2 = vcmask 162816   ;;  %s155_s1 = inlined_call_operand.vmem [shape: bf16[20,32], index: 1, kind: input, shape index: {}]   ;;  %s156_s0 = inlined_call_operand.vmem [shape: f32[16,20], index: 0, kind: input, shape index: {}]   ;;  %s157_s2 = inlined_call_operand.vmem [shape: f32[1,32], index: 2, kind: input, shape index: {}]   ;;  %s158_s3 = inlined_call_operand.vmem [shape: f32[16,32], index: 3, kind: output, shape index: {}]  }
   0x1   :  { %100 = vmatprep.subr.bf16.mxu0 %v112_v0  ;;  %v110_v1 = vld [vmem:[%s155_s1] sm:$0xff]   ;;  %104 = vmatprep.mubr.msk.bf16.mxu0 %vm113_vm1, %v112_v0  ;;  %v111_v2 = vld [vmem:[%s155_s1 + $0x8] ss:$0 sps:$4 sm:$0x33]   ;;  %vm86_vm3 = vcmask 261120  }
   0x2   :  { %101 = vmatpush3.bf16.msra.mxu0 %v110_v1  ;;  %v15_v3 = vld [vmem:[%s156_s0] sm:$0xff]  ;;  %v16_v4 = vld [vmem:[%s156_s0 + $0x8] sm:$0xff]  ;;  %v43_v5 = vsel %vm41_vm0, %v111_v2, 0 }
   0x3   :  { %102 = vmatprep.subr.bf16.mxu0 %v112_v0  ;;  %v17_v6 = vpack.c.bf16 %v16_v4, %v15_v3  ;;  %v93_v7 = vld [vmem:[%s157_s2] ss:$0 sm:$0xff] }
   0x6   :  { %103 = vmatpush3.bf16.msra.mxu0 %v43_v5 }
   0x9   :  { %105 = vmatmul.mubr.msk.bf16.vlgmr.msra.gmra.mrb[0].mxu0 %vm37_vm2, %v17_v6 }
  0xdc   :  { %v79_v8 = vpop.f32.mrb[0].mxu0 }
  0xdd   :  { %v80_v9 = vadd.f32 %v93_v7, %v79_v8  ;;  %v106_v10 = vpop.f32.mrb[1].mxu0 }
  0xde   :  { %v82_v11 = vpop.f32.mrb[2].mxu0 }
  0xdf   :  { %87 = vst.msk [vmem:[%s158_s3] sm:$0xff] %vm86_vm3, %v80_v9  ;;  %v83_v12 = vadd.f32 %v93_v7, %v82_v11  ;;  %v107_v13 = vpop.f32.mrb[3].mxu0 }
  0xe1   :  { %88 = vst.msk [vmem:[%s158_s3 + $0x8] sm:$0xff] %vm86_vm3, %v83_v12 }

// kernel: sdif_forward.7
= control target key start
LH: loop header
LB: loop body
LE: loop exit
PB: predicated region body
PF: predicated region fallthrough
CT: control target
= control target key end

     0   :  { %v254_v5 = vmov 0.0   ;;  %s255_s28 = smov 32   ;;  %vm25_vm0 = vcmask 261120   ;;  %vm256_vm1 = vmmov 0   ;;  %s257_s8 = smov 64   ;;  %s345_s0 = inlined_call_operand.vmem [shape: f32[16,32], index: 0, kind: input, shape index: {}]   ;;  %s346_s1 = inlined_call_operand.vmem [shape: f32[16,32], index: 1, kind: input, shape index: {}]   ;;  %s347_s2 = inlined_call_operand.vmem [shape: f32[16,32], index: 2, kind: input, shape index: {}]   ;;  %s348_s3 = inlined_call_operand.vmem [shape: bf16[96,32], index: 3, kind: input, shape index: {}]   ;;  %s349_s4 = inlined_call_operand.vmem [shape: f32[1,32], index: 4, kind: input, shape index: {}]   ;;  %s350_s5 = inlined_call_operand.hbm [shape: f32[16,32], index: 5, kind: output, shape index: {}]  }
   0x1   :  { %v27_v0 = vld [vmem:[%s346_s1] sm:$0xff]  ;;  %v28_v1 = vld [vmem:[%s346_s1 + $0x8] sm:$0xff]  ;;  %197 = vmatprep.subr.bf16.mxu0 %v254_v5  ;;  %209 = vmatprep.mubr.msk.bf16.mxu0 %vm256_vm1, %v254_v5  ;;  %v222_v12 = vld [vmem:[%s348_s3 + $0x10] sm:$0xff]  }
   0x2   :  { %v36_v2 = vld [vmem:[%s347_s2] sm:$0xff]  ;;  %v29_v3 = vpack.c.bf16 %v28_v1, %v27_v0  ;;  %v37_v4 = vld [vmem:[%s347_s2 + $0x8] sm:$0xff] }
   0x3   :  { %v220_v6 = vld [vmem:[%s348_s3] sm:$0xff]   ;;  %v38_v7 = vpack.c.bf16 %v37_v4, %v36_v2  ;;  %v221_v8 = vld [vmem:[%s348_s3 + $0x8] sm:$0xff]  }
   0x4   :  { %31 = vrot.lane.b32.xlu0 %v29_v3, %s255_s28  ;;  %198 = vmatpush3.bf16.msra.mxu0 %v220_v6  ;;  %v22_v9 = vld [vmem:[%s345_s0] sm:$0xff]  ;;  %v23_v10 = vld [vmem:[%s345_s0 + $0x8] sm:$0xff] }
   0x5   :  { %199 = vmatprep.subr.bf16.mxu0 %v254_v5  ;;  %v24_v11 = vpack.c.bf16 %v23_v10, %v22_v9 }
   0x7   :  { %26 = vst.msk [vmem:[#allocation2] sm:$0xff] %vm25_vm0, %v24_v11 }
   0x8   :  { %40 = vrot.lane.b32.xlu0 %v38_v7, %s257_s8  ;;  %200 = vmatpush3.bf16.msra.mxu0 %v221_v8 }
   0x9   :  { %10 = vsyncpa [#allocation4], 0  ;;  %201 = vmatprep.subr.bf16.mxu0 %v254_v5  ;;  %v223_v13 = vld [vmem:[%s348_s3 + $0x18] sm:$0xff]   ;;  %v224_v14 = vld [vmem:[%s348_s3 + $0x20] sm:$0xff]   ;;  %vm34_vm2 = vcmask 523520   ;;  %vm43_vm3 = vcmask 785920  }
   0xa   :  { %v225_v15 = vld [vmem:[%s348_s3 + $0x28] sm:$0xff]   ;;  %vm101_vm4 = vcmask 785408   ;;  %v182_v19 = vld [vmem:[%s349_s4] ss:$0 sm:$0xff]  ;;  %s258_s3 = smov [#allocation3]  }
   0xb   :  { %s171_s4 = sshll.u32 %s258_s3, 4  ;;  %s172_s4 = int_to_ptr.vmem [resolvable:$true] %s171_s4 }
   0xc   :  { %202 = vmatpush3.bf16.msra.mxu0 %v222_v12  ;;  %s230_s18 = scalar_lea.vmem %s172_s4, 256  ;;  %p235_p1 = scmp.lt.s32.totalorder %s172_s4, %s172_s4 }
   0xd   :  { %203 = vmatprep.subr.bf16.mxu0 %v254_v5  ;;  %p231_p0 = scmp.ne.s32.totalorder %s172_s4, %s230_s18  ;;  %p236_p2 = scmp.lt.s32.totalorder %s230_s18, %s230_s18 }
   0xf   :  { %p237_p3 = por %p236_p2, %p235_p1 }
  0x10   :  { %204 = vmatpush3.bf16.msra.mxu0 %v223_v13 }
  0x11   :  { %205 = vmatprep.subr.bf16.mxu0 %v254_v5  ;;  %p238_p4 = pnand %p237_p3, %p231_p0 }
  0x14   :  { %206 = vmatpush3.bf16.msra.mxu0 %v224_v14 }
  0x15   :  { %207 = vmatprep.subr.bf16.mxu0 %v254_v5 }
  0x18   :  { %208 = vmatpush3.bf16.msra.mxu0 %v225_v15 }
  0x76   :  { %v32_v16 = vpop.permute.xlu0 %31 }
  0x77   :  { %35 = vst.msk [vmem:[#allocation2] sm:$0xff] %vm34_vm2, %v32_v16 }
  0x7a   :  { %v41_v17 = vpop.permute.xlu0 %40 }
  0x7b   :  { %44 = vst.msk [vmem:[#allocation2] sm:$0xff] %vm43_vm3, %v41_v17 }
  0x82   :  { %v45_v18 = vld [vmem:[#allocation2] sm:$0xff] }
  0x83   :  { %210 = vmatmul.mubr.msk.bf16.vlgmr.msra.gmra.mrb[0].mxu0 %vm101_vm4, %v45_v18 }
 0x156   :  { %v139_v20 = vpop.f32.mrb[0].mxu0 }
 0x157   :  { %v140_v21 = vadd.f32 %v182_v19, %v139_v20  ;;  %v211_v22 = vpop.f32.mrb[1].mxu0 }
 0x158   :  { %v142_v23 = vpop.f32.mrb[2].mxu0 }
 0x159   :  { %v148_v24 = vmul.f32 0.044715, %v140_v21  ;;  %v143_v25 = vadd.f32 %v182_v19, %v142_v23  ;;  %v212_v26 = vpop.f32.mrb[3].mxu0  ;;  %v146_v37 = vmul.f32 0.5, %v140_v21 }
 0x15b   :  { %v150_v27 = vmul.f32 %v148_v24, %v140_v21  ;;  %v149_v28 = vmul.f32 0.044715, %v143_v25  ;;  %v147_v40 = vmul.f32 0.5, %v143_v25 }
 0x15d   :  { %v152_v29 = vmul.f32 %v150_v27, %v140_v21  ;;  %v151_v30 = vmul.f32 %v149_v28, %v143_v25 }
 0x15f   :  { %v154_v31 = vadd.f32 %v152_v29, %v140_v21  ;;  %v153_v32 = vmul.f32 %v151_v30, %v143_v25 }
 0x161   :  { %v156_v33 = vmul.f32 0.7978846, %v154_v31  ;;  %v155_v34 = vadd.f32 %v153_v32, %v143_v25 }
 0x163   :  { %226 = vtanh.f32 %v156_v33  ;;  %v157_v35 = vmul.f32 0.7978846, %v155_v34 }
 0x165   :  { %228 = vtanh.f32 %v157_v35 }
 0x16d   :  { %v227_v36 = vpop.eup %226 }
 0x16e   :  { %v160_v38 = vadd.f32 1.0, %v227_v36 }
 0x16f   :  { %v229_v39 = vpop.eup %228 }
 0x170   :  { %v161_v41 = vadd.f32 1.0, %v229_v39  ;;  %v162_v42 = vmul.f32 %v160_v38, %v146_v37 }
 0x172   :  { %v163_v43 = vmul.f32 %v161_v41, %v147_v40  ;;  %164 = vst.msk [vmem:[#allocation3] sm:$0xff] %vm25_vm0, %v162_v42 }
 0x174   :  { %165 = vst.msk [vmem:[#allocation3 + $0x8] sm:$0xff] %vm25_vm0, %v163_v43 }
 0x175   :  { %241 = shalt.err (!%p238_p4)
}
 0x176   :  { %s242_s21 = scalar_lea.hbm %s350_s5, 256 }
 0x177   :  { %p243_p5 = scmp.ne.s32.totalorder %s350_s5, %s242_s21  ;;  %p246_p6 = scmp.lt.u32.totalorder %s242_s21, %s350_s5 }
 0x179   :  { %p248_p7 = pnand %p246_p6, %p243_p5 }
 0x17b   :  { %251 = shalt.err (!%p248_p7)
}
 0x17c   :  { %s259_s26 = smov 128   ;;  %s260_s27 = smov 8  }
 0x17d   :  { %177 = dma.vmem_to_hbm [thread:$0]  %s172_s4, 256, %s350_s5, [#allocation4], %s259_s26, %s259_s26, %s260_s27  }
 0x17e   :  { %252 = dma.done.wait [#allocation4], 256  }
 0x17f   :  { %253 = vsyncadd [#allocation4], 4294967040 }
 0x180   :  { %181 = vsyncpa [#allocation4], 1 }

// kernel: sdif_forward.5
= control target key start
LH: loop header
LB: loop body
LE: loop exit
PB: predicated region body
PF: predicated region fallthrough
CT: control target
= control target key end

     0   :  { %s3286_s18 = smov 0   ;;  %s3288_s19 = smov 0   ;;  %s3761_s0 = inlined_call_operand.vmem [shape: f32[2,2,8,32], index: 0, kind: input, shape index: {}]   ;;  %s3762_s1 = inlined_call_operand.vmem [shape: f32[2,2,8,32], index: 1, kind: input, shape index: {}]   ;;  %s3763_s2 = inlined_call_operand.vmem [shape: f32[2,2,1,8], index: 2, kind: input, shape index: {}]   ;;  %s3764_s3 = inlined_call_operand.vmem [shape: bf16[2,32,32], index: 3, kind: input, shape index: {}]   ;;  %s3765_s4 = inlined_call_operand.vmem [shape: f32[2,1,32], index: 4, kind: input, shape index: {}]   ;;  %s3766_s5 = inlined_call_operand.vmem [shape: bf16[2,32,64], index: 5, kind: input, shape index: {}]   ;;  %s3767_s6 = inlined_call_operand.vmem [shape: f32[2,1,64], index: 6, kind: input, shape index: {}]   ;;  %s3768_s7 = inlined_call_operand.vmem [shape: bf16[2,32,32], index: 7, kind: input, shape index: {}]   ;;  %s3769_s8 = inlined_call_operand.vmem [shape: f32[2,1,32], index: 8, kind: input, shape index: {}]   ;;  %s3770_s9 = inlined_call_operand.vmem [shape: f32[2,2,32], index: 9, kind: input, shape index: {}]   ;;  %s3771_s10 = inlined_call_operand.vmem [shape: bf16[2,32,128], index: 10, kind: input, shape index: {}]   ;;  %s3772_s11 = inlined_call_operand.vmem [shape: f32[2,1,128], index: 11, kind: input, shape index: {}]   ;;  %s3773_s12 = inlined_call_operand.vmem [shape: bf16[2,128,32], index: 12, kind: input, shape index: {}]   ;;  %s3774_s13 = inlined_call_operand.vmem [shape: f32[2,1,32], index: 13, kind: input, shape index: {}]   ;;  %s3775_s14 = inlined_call_operand.vmem [shape: f32[2,2,32], index: 14, kind: input, shape index: {}]   ;;  %s3776_s15 = inlined_call_operand.vmem [shape: f32[2,2,8,32], index: 15, kind: output, shape index: {}]  }
   0x1   :  { %3790 = sst [smem:[#allocation3_spill]] %s3761_s0  ;;  %s3290_s20 = smov 0  }
   0x2 LB: > { %s37_s21 = sadd.s32 1, %s3188_s19  ;;  %p2719_p0 = scmp.ge.s32.totalorder %s3192_s20, 1  ;;  %s3192_s20 = sphi %s3290_s20, %s25_s20   ;;  %s3188_s19 = sphi %s3288_s19, %s3803_s19   ;;  %s3184_s18 = sphi %s3286_s18, %s3802_s18  }
   0x3   : > { %p39_p1 = scmp.ge.s32.totalorder %s37_s21, 2  ;;  %p599_p2 = scmp.lt.s32.totalorder %s3192_s20, 3 }
   0x5   : > { %s3805_s21 = smov (%p39_p1, %s37_s21), 0  ;;  %p600_p3 = pnand %p2719_p0, %p599_p2 }
   0x6   : > { %p721_p4 = scmp.lt.s32.totalorder (!%p600_p3), %s3184_s18, 1  ;;  %v3194_v0 = vmov (!%p600_p3), 0.0   ;;  %vm3195_vm0 = vmmov (!%p600_p3), 0   ;;  %s3791_s0 = sld [smem:[#allocation3_spill]] (!%p600_p3)  ;;  %vm870_vm1 = vcmask (!%p600_p3), 261120   ;;  %vm977_vm2 = vcmask (!%p600_p3), 64512  }
   0x7   : > { %603 = sbr.rel (%p600_p3) target bundleno = 4377 (0x1119), region = 80  ;;  %2874 = vmatprep.subr.bf16.mxu1 (!%p600_p3), %v3194_v0  ;;  %2878 = vmatprep.mubr.msk.bf16.mxu1 (!%p600_p3), %vm3195_vm0, %v3194_v0  ;;  %s3783_s17 = smov (!%p600_p3), 112   ;;  %v1528_v24 = vlaneseq (!%p600_p3)  ;;  %vm1050_vm3 = vcmask (!%p600_p3), 1043456   ;;  %vm1212_vm4 = vcmask (!%p600_p3), 130112   ;;  %vm1330_vm5 = vcmask (!%p600_p3), 195712  }
   0x8   : > { %2902 = vmatprep.subr.bf16.mxu0 (!%p600_p3), %v3194_v0  ;;  %2904 = vmatprep.mubr.msk.bf16.mxu0 (!%p600_p3), %vm3195_vm0, %v3194_v0  ;;  %s3788_s23 = smov (!%p600_p3), 120   ;;  %vm1448_vm6 = vcmask (!%p600_p3), 261312  }
   0x9   : > { %v3401_v25 = vshrl.u32 (!%p600_p3), %v1528_v24, 7 }
   0xb   : > { %v1530_v27 = vsub.s32 (!%p600_p3), 0, %v3401_v25  ;;  %v1535_v28 = vsub.s32 (!%p600_p3), 1, %v3401_v25 }
   0xe   : > { %s3807_s18 = smov (!%p721_p4, %s3184_s18), 1 }
   0xf   : > { %s3313_s22 = sshll.u32 %s3807_s18, 4  ;;  %s764_s27 = scalar_lea.vmem %s3767_s6, %s3807_s18 }
  0x10   : > { %s753_s25 = scalar_lea.vmem %s3764_s3, %s3313_s22  ;;  %s3323_s28 = scalar_lea.vmem %s3791_s0, %s3313_s22  ;;  %v3371_v13 = vld [vmem:[%s764_s27] ss:$0 sm:$0xff] }
  0x11   : > { %v3325_v1 = vld [vmem:[%s753_s25] sm:$0xff]   ;;  %s761_s16 = scalar_lea.vmem %s3766_s5, %s3313_s22  ;;  %v3332_v2 = vld [vmem:[%s753_s25 + $0x8] sm:$0xff]   ;;  %s3348_s24 = scalar_lea.vmem %s3762_s1, %s3313_s22 }
  0x12   : > { %2875 = vmatpush3.bf16.msra.mxu1 %v3325_v1  ;;  %v3335_v3 = vld [vmem:[%s3323_s28] sm:$0xff]  ;;  %v3352_v6 = vld [vmem:[%s761_s16 + $0x8] sm:$0xff]   ;;  %s3781_s25 = smov 104   ;;  %s3395_s26 = sshll.u32 %s3807_s18, 1 }
  0x13   : > { %2876 = vmatprep.subr.bf16.mxu1 %v3194_v0  ;;  %v851_v4 = vpack.c.bf16 %v3335_v3, %v3335_v3  ;;  %v3341_v5 = vld [vmem:[%s761_s16] sm:$0xff]   ;;  %s756_s16 = scalar_lea.vmem %s3765_s4, %s3807_s18  ;;  %s796_s30 = scalar_lea.vmem %s3775_s14, %s3395_s26 }
  0x14   : > { %v848_v7 = vld [vmem:[%s3348_s24] sm:$0xff]  ;;  %s3432_s29 = scalar_lea.vmem %s3763_s2, %s3395_s26  ;;  %s3779_s27 = smov 72  }
  0x15   : > { %v849_v8 = vpack.c.bf16 %v848_v7, %v848_v7  ;;  %v3373_v14 = vld [vmem:[%s756_s16] ss:$0 sm:$0xff]  ;;  %s3778_s16 = smov 80  }
  0x16   : > { %2877 = vmatpush3.bf16.msra.mxu1 %v3332_v2  ;;  %v846_v26 = vld [vmem:[%s796_s30] sm:$0x3]  ;;  %s3777_s30 = smov 96  }
  0x17   : > { %2882 = vmatprep.subr.bf16.mxu1 %v3194_v0  ;;  %v3407_v29 = vrot.slane %v846_v26, %v1530_v27  ;;  %v3411_v30 = vrot.slane %v846_v26, %v1535_v28  ;;  %v2748_v41 = vld [vmem:[%s3432_s29] ss:$0 sm:$0xff] }
  0x19   : > { %2879 = vmatmul.mubr.msk.bf16.vlgmr.msra.gmra.mrb[0].mxu1 %vm870_vm1, %v851_v4 }
  0x1a   : > { %2883 = vmatpush3.bf16.msra.mxu1 %v3341_v5  ;;  %2886 = vmatprep.mubr.msk.bf16.mxu1 %vm3195_vm0, %v3194_v0 }
  0x1b   : > { %2884 = vmatprep.subr.bf16.mxu1 %v3194_v0 }
  0x1e   : > { %2885 = vmatpush3.bf16.msra.mxu1 %v3352_v6 }
  0x1f   : > { %2890 = vmatprep.subr.bf16.mxu1 %v3194_v0 }
  0x21   : > { %2887 = vmatmul.mubr.msk.bf16.vlgmr.msra.gmra.mrb[4].mxu1 %vm870_vm1, %v849_v8 }
  0x22   : > { %2892 = vmatprep.mubr.msk.bf16.mxu1 %vm3195_vm0, %v3194_v0 }
  0xec   : > { %v908_v9 = vpop.f32.mrb[0].mxu1 }
  0xed   : > { %v2880_v10 = vpop.f32.mrb[1].mxu1  ;;  %v909_v19 = vadd.f32 %v3373_v14, %v908_v9 }
  0xee   : > { %v911_v11 = vpop.f32.mrb[2].mxu1 }
  0xef   : > { %v2881_v12 = vpop.f32.mrb[3].mxu1  ;;  %v975_v23 = vpack.c.bf16 %v909_v19, %v909_v19 }
  0xf4   : > { %v969_v15 = vpop.f32.mrb[4].mxu1 }
  0xf5   : > { %v970_v16 = vadd.f32 %v3371_v13, %v969_v15  ;;  %v2888_v17 = vpop.f32.mrb[5].mxu1 }
  0xf6   : > { %v972_v18 = vpop.f32.mrb[6].mxu1 }
  0xf7   : > { %v3377_v20 = vpack.c.bf16 %v970_v16, %v970_v16  ;;  %v2889_v21 = vpop.f32.mrb[7].mxu1 }
  0xf9   : > { %1216 = vrot.lane.b32.xlu1 %v3377_v20, %s3783_s17  ;;  %1098 = vrot.lane.b32.xlu0 %v3377_v20, %s3788_s23  ;;  %v982_v22 = vsel %vm977_vm2, %v3377_v20, 0 }
  0xfa   : > { %2891 = vmatpush3.bf16.xpose.msra.mxu1 %v982_v22 }
  0xfb   : > { %2896 = vmatprep.subr.bf16.mxu1 %v3194_v0 }
  0xfd   : > { %1214 = vrot.lane.b32.xlu1 %v975_v23, %s3783_s17  ;;  %1096 = vrot.lane.b32.xlu0 %v975_v23, %s3788_s23  ;;  %s3786_s17 = smov 16   ;;  %s3793_s23 = smov 112  }
 0x101   : > { %1332 = vrot.lane.b32.xlu1 %v975_v23, %s3781_s25  ;;  %1334 = vrot.lane.b32.xlu0 %v3377_v20, %s3781_s25  ;;  %s769_s25 = scalar_lea.vmem %s3768_s7, %s3313_s22 }
 0x102   : > { %2893 = vmatmul.mubr.msk.bf16.vlgmr.msra.gmra.mrb[8].mxu1 %vm977_vm2, %v975_v23 }
 0x103   : > { %2898 = vmatprep.mubr.msk.bf16.mxu1 %vm3195_vm0, %v3194_v0 }
 0x16b   : > { %v1099_v31 = vpop.permute.xlu0 %1098  ;;  %v1217_v33 = vpop.permute.xlu1 %1216 }
 0x16c   : > { %v1104_v32 = vsel %vm977_vm2, %v1099_v31, 0  ;;  %v1222_v35 = vsel %vm977_vm2, %v1217_v33, 0 }
 0x16d   : > { %2903 = vmatpush3.bf16.xpose.msra.mxu0 %v1104_v32 }
 0x16e   : > { %2914 = vmatprep.subr.bf16.mxu0 %v3194_v0 }
 0x16f   : > { %v1097_v34 = vpop.permute.xlu0 %1096  ;;  %v1215_v37 = vpop.permute.xlu1 %1214 }
 0x173   : > { %v1335_v36 = vpop.permute.xlu0 %1334  ;;  %v1333_v39 = vpop.permute.xlu1 %1332 }
 0x174   : > { %2905 = vmatmul.mubr.msk.bf16.vlgmr.msra.gmra.mrb[0].mxu0 %vm977_vm2, %v1097_v34  ;;  %v1340_v38 = vsel %vm977_vm2, %v1335_v36, 0 }
 0x175   : > { %2915 = vmatpush3.bf16.xpose.msra.mxu0 %v1222_v35  ;;  %2916 = vmatprep.mubr.msk.bf16.mxu0 %vm3195_vm0, %v3194_v0 }
 0x176   : > { %2926 = vmatprep.subr.bf16.mxu0 %v3194_v0 }
 0x17c   : > { %2917 = vmatmul.mubr.msk.bf16.vlgmr.msra.gmra.mrb[4].mxu0 %vm977_vm2, %v1215_v37 }
 0x17d   : > { %2927 = vmatpush3.bf16.xpose.msra.mxu0 %v1340_v38  ;;  %2928 = vmatprep.mubr.msk.bf16.mxu0 %vm3195_vm0, %v3194_v0 }
 0x17e   : > { %2938 = vmatprep.subr.bf16.mxu0 %v3194_v0 }
 0x184   : > { %2929 = vmatmul.mubr.msk.bf16.vlgmr.msra.gmra.mrb[8].mxu0 %vm977_vm2, %v1333_v39 }
 0x185   : > { %2942 = vmatprep.mubr.msk.bf16.mxu0 %vm3195_vm0, %v3194_v0 }
 0x1d5   : > { %v1018_v40 = vpop.f32.mrb[8].mxu1 }
 0x1d6   : > { %v1024_v42 = vmul.f32 0.35355338, %v1018_v40  ;;  %v2894_v43 = vpop.f32.mrb[9].mxu1 }
 0x1d7   : > { %v1021_v44 = vpop.f32.mrb[10].mxu1 }
 0x1d8   : > { %v2895_v45 = vpop.f32.mrb[11].mxu1  ;;  %v1031_v46 = vadd.f32 %v2748_v41, %v1024_v42 }
 0x1da   : > { %v1032_v47 = vsel %vm977_vm2, %v1031_v46, -inf }
 0x1db   : > { %1033 = vmax.xlane.f32.xlu0 %v1032_v47 }
 0x247   : > { %v1140_v48 = vpop.f32.mrb[0].mxu0 }
 0x248   : > { %v1146_v49 = vmul.f32 0.35355338, %v1140_v48  ;;  %v2906_v50 = vpop.f32.mrb[1].mxu0 }
 0x249   : > { %v1143_v51 = vpop.f32.mrb[2].mxu0 }
 0x24a   : > { %v2907_v52 = vpop.f32.mrb[3].mxu0  ;;  %v1147_v53 = vadd.f32 %v2748_v41, %v1146_v49 }
 0x24c   : > { %v1148_v54 = vsel %vm977_vm2, %v1147_v53, -inf }
 0x24d   : > { %1149 = vmax.xlane.f32.xlu1 %v1148_v54 }
 0x24f   : > { %v1258_v55 = vpop.f32.mrb[4].mxu0 }
 0x250   : > { %v1264_v56 = vmul.f32 0.35355338, %v1258_v55  ;;  %v2918_v57 = vpop.f32.mrb[5].mxu0 }
 0x251   : > { %v1261_v58 = vpop.f32.mrb[6].mxu0 }
 0x252   : > { %v2919_v59 = vpop.f32.mrb[7].mxu0  ;;  %v1265_v60 = vadd.f32 %v2748_v41, %v1264_v56 }
 0x254   : > { %v1266_v61 = vsel %vm977_vm2, %v1265_v60, -inf }
 0x255   : > { %1267 = vmax.xlane.f32.xlu0 %v1266_v61 }
 0x257   : > { %v1376_v62 = vpop.f32.mrb[8].mxu0 }
 0x258   : > { %v1382_v63 = vmul.f32 0.35355338, %v1376_v62  ;;  %v2930_v4 = vpop.f32.mrb[9].mxu0 }
 0x259   : > { %v1379_v7 = vpop.f32.mrb[10].mxu0 }
 0x25a   : > { %v2931_v8 = vpop.f32.mrb[11].mxu0  ;;  %v1383_v9 = vadd.f32 %v2748_v41, %v1382_v63 }
 0x25c   : > { %v1384_v10 = vsel %vm977_vm2, %v1383_v9, -inf }
 0x25d   : > { %1385 = vmax.xlane.f32.xlu0 %v1384_v10 }
 0x268   : > { %v1034_v11 = vpop.xlane.xlu0 %1033 }
 0x269   : > { %v1035_v12 = vsub.f32 %v1031_v46, %v1034_v11 }
 0x26b   : > { %v1036_v15 = vmul.f32 1.442695, %v1035_v12  ;;  %v3477_v12 = vld [vmem:[%s769_s25] sm:$0xff]  }
 0x26c   : > { %2939 = vmatpush3.bf16.msra.mxu0 %v3477_v12 }
 0x26d   : > { %3126 = vpow2.f32 %v1036_v15  ;;  %v3480_v15 = vld [vmem:[%s769_s25 + $0x8] sm:$0xff]   ;;  %2940 = vmatprep.subr.bf16.mxu0 %v3194_v0  ;;  %s3798_s25 = smov 80  }
 0x270   : > { %2941 = vmatpush3.bf16.msra.mxu0 %v3480_v15 }
 0x271   : > { %2954 = vmatprep.subr.bf16.mxu0 %v3194_v0 }
 0x277   : > { %v3127_v16 = vpop.eup %3126 }
 0x278   : > { %v1038_v17 = vsel %vm977_vm2, %v3127_v16, 0.0 }
 0x279   : > { %1039 = vadd.xlane.f32.xlu1 %v1038_v17 }
 0x28a   : > { %1045 = vrot.lane.b32.xlu1 %v3377_v20, %s3777_s30  ;;  %s3780_s30 = smov 88  }
 0x2da   : > { %v1150_v18 = vpop.xlane.xlu1 %1149 }
 0x2db   : > { %v1151_v19 = vsub.f32 %v1147_v53, %v1150_v18 }
 0x2dd   : > { %v1152_v21 = vmul.f32 1.442695, %v1151_v19 }
 0x2df   : > { %3128 = vpow2.f32 %v1152_v21 }
 0x2e2   : > { %v1268_v22 = vpop.xlane.xlu0 %1267 }
 0x2e3   : > { %v1269_v23 = vsub.f32 %v1265_v60, %v1268_v22 }
 0x2e5   : > { %v1270_v24 = vmul.f32 1.442695, %v1269_v23 }
 0x2e7   : > { %3130 = vpow2.f32 %v1270_v24 }
 0x2e9   : > { %v3129_v26 = vpop.eup %3128 }
 0x2ea   : > { %v1386_v31 = vpop.xlane.xlu0 %1385  ;;  %v1154_v32 = vsel %vm977_vm2, %v3129_v26, 0.0 }
 0x2eb   : > { %v1387_v33 = vsub.f32 %v1383_v9, %v1386_v31  ;;  %1155 = vadd.xlane.f32.xlu0 %v1154_v32 }
 0x2ed   : > { %v1388_v34 = vmul.f32 1.442695, %v1387_v33 }
 0x2ef   : > { %3132 = vpow2.f32 %v1388_v34 }
 0x2f1   : > { %v3131_v35 = vpop.eup %3130 }
 0x2f2   : > { %v1272_v36 = vsel %vm977_vm2, %v3131_v35, 0.0 }
 0x2f3   : > { %1273 = vadd.xlane.f32.xlu1 %v1272_v36 }
 0x2f9   : > { %v3133_v37 = vpop.eup %3132 }
 0x2fa   : > { %v1390_v38 = vsel %vm977_vm2, %v3133_v37, 0.0 }
 0x2fb   : > { %1391 = vadd.xlane.f32.xlu0 %v1390_v38 }
 0x304   : > { %1278 = vrot.lane.b32.xlu1 %v3377_v20, %s3778_s16  ;;  %s3787_s16 = smov 8  }
 0x306   : > { %v1040_v39 = vpop.xlane.xlu1 %1039 }
 0x307   : > { %3134 = vrcp.f32 %v1040_v39 }
 0x308   : > { %1396 = vrot.lane.b32.xlu1 %v3377_v20, %s3779_s27  ;;  %s781_s27 = scalar_lea.vmem %s3771_s10, %s3313_s22 }
 0x30a   : > { %v1046_v40 = vpop.permute.xlu1 %1045 }
 0x30b   : > { %v1052_v41 = vsel %vm1050_vm3, %v1046_v40, 0 }
 0x30c   : > { %2897 = vmatpush3.bf16.msra.mxu1 %v1052_v41 }
 0x30d   : > { %2908 = vmatprep.subr.bf16.mxu1 %v3194_v0 }
 0x311   : > { %v3135_v42 = vpop.eup %3134  ;;  %1160 = vrot.lane.b32.xlu0 %v3377_v20, %s3780_s30  ;;  %s3785_s30 = smov 24  }
 0x312   : > { %v1042_v43 = vmul.f32 %v3135_v42, %v3127_v16 }
 0x314   : > { %v1043_v44 = vpack.c.bf16 %v1042_v43, %v1042_v43 }
 0x316   : > { %2899 = vmatmul.mubr.msk.bf16.vlgmr.msra.gmra.mrb[12].mxu1 %vm977_vm2, %v1043_v44 }
 0x317   : > { %2910 = vmatprep.mubr.msk.bf16.mxu1 %vm3195_vm0, %v3194_v0 }
 0x378   : > { %v1156_v45 = vpop.xlane.xlu0 %1155 }
 0x379   : > { %3136 = vrcp.f32 %v1156_v45 }
 0x380   : > { %v1274_v46 = vpop.xlane.xlu1 %1273 }
 0x381   : > { %3138 = vrcp.f32 %v1274_v46 }
 0x383   : > { %v3137_v47 = vpop.eup %3136 }
 0x384   : > { %v1158_v49 = vmul.f32 %v3137_v47, %v3129_v26  ;;  %v1279_v52 = vpop.permute.xlu1 %1278 }
 0x385   : > { %v1284_v54 = vsel %vm1050_vm3, %v1279_v52, 0 }
 0x386   : > { %v1159_v20 = vpack.c.bf16 %v1158_v49, %v1158_v49 }
 0x388   : > { %v1392_v48 = vpop.xlane.xlu0 %1391  ;;  %v1397_v56 = vpop.permute.xlu1 %1396 }
 0x389   : > { %3140 = vrcp.f32 %v1392_v48  ;;  %v1402_v59 = vsel %vm1050_vm3, %v1397_v56, 0  ;;  %v3507_v48 = vld [vmem:[%s781_s27] sm:$0xff]  }
 0x38b   : > { %v3139_v53 = vpop.eup %3138 }
 0x38c   : > { %v1161_v50 = vpop.permute.xlu0 %1160  ;;  %v1276_v55 = vmul.f32 %v3139_v53, %v3131_v35 }
 0x38d   : > { %v1166_v51 = vsel %vm1050_vm3, %v1161_v50, 0 }
 0x38e   : > { %2909 = vmatpush3.bf16.msra.mxu1 %v1166_v51  ;;  %v1277_v57 = vpack.c.bf16 %v1276_v55, %v1276_v55 }
 0x38f   : > { %2920 = vmatprep.subr.bf16.mxu1 %v3194_v0 }
 0x391   : > { %2911 = vmatmul.mubr.msk.bf16.vlgmr.msra.gmra.mrb[16].mxu1 %vm977_vm2, %v1159_v20 }
 0x392   : > { %2921 = vmatpush3.bf16.msra.mxu1 %v1284_v54  ;;  %2922 = vmatprep.mubr.msk.bf16.mxu1 %vm3195_vm0, %v3194_v0 }
 0x393   : > { %2932 = vmatprep.subr.bf16.mxu1 %v3194_v0  ;;  %v3141_v58 = vpop.eup %3140 }
 0x394   : > { %v1394_v60 = vmul.f32 %v3141_v58, %v3133_v37 }
 0x396   : > { %v1395_v61 = vpack.c.bf16 %v1394_v60, %v1394_v60  ;;  %v3546_v60 = vld [vmem:[%s3323_s28 + $0x8] sm:$0xff]  ;;  %s3800_s28 = smov 16  }
 0x397   : > { %v1736_v25 = vpack.c.bf16 %v3546_v60, %v3546_v60 }
 0x399   : > { %2923 = vmatmul.mubr.msk.bf16.vlgmr.msra.gmra.mrb[20].mxu1 %vm977_vm2, %v1277_v57 }
 0x39a   : > { %2933 = vmatpush3.bf16.msra.mxu1 %v1402_v59  ;;  %2934 = vmatprep.mubr.msk.bf16.mxu1 %vm3195_vm0, %v3194_v0 }
 0x39b   : > { %2946 = vmatprep.subr.bf16.mxu1 %v3194_v0 }
 0x3a1   : > { %2935 = vmatmul.mubr.msk.bf16.vlgmr.msra.gmra.mrb[24].mxu1 %vm977_vm2, %v1395_v61 }
 0x3a2   : > { %2950 = vmatprep.mubr.msk.bf16.mxu1 %vm3195_vm0, %v3194_v0  ;;  %2947 = vmatpush3.bf16.msra.mxu1 %v3507_v48 }
 0x3a3   : > { %2948 = vmatprep.subr.bf16.mxu1 %v3194_v0 }
 0x3e9   : > { %v1088_v62 = vpop.f32.mrb[12].mxu1 }
 0x3ea   : > { %1094 = vst.msk [vmem:[#allocation2] sm:$0xff] %vm977_vm2, %v1088_v62  ;;  %v2900_v63 = vpop.f32.mrb[13].mxu1 }
 0x3eb   : > { %v1091_v4 = vpop.f32.mrb[14].mxu1 }
 0x3ec   : > { %v2901_v7 = vpop.f32.mrb[15].mxu1 }
 0x464   : > { %v1202_v8 = vpop.f32.mrb[16].mxu1 }
 0x465   : > { %1209 = vrot.lane.b32.xlu0 %v1202_v8, %s3787_s16  ;;  %v2912_v9 = vpop.f32.mrb[17].mxu1  ;;  %s3796_s16 = smov 96  }
 0x466   : > { %v1205_v10 = vpop.f32.mrb[18].mxu1 }
 0x467   : > { %v2913_v11 = vpop.f32.mrb[19].mxu1 }
 0x46c   : > { %v1320_v16 = vpop.f32.mrb[20].mxu1 }
 0x46d   : > { %1327 = vrot.lane.b32.xlu1 %v1320_v16, %s3786_s17  ;;  %v2924_v17 = vpop.f32.mrb[21].mxu1  ;;  %s2798_s17 = sshll.u32 %s3807_s18, 6 }
 0x46e   : > { %v1323_v18 = vpop.f32.mrb[22].mxu1  ;;  %s3519_s0 = scalar_lea.vmem %s3773_s12, %s2798_s17  ;;  %s784_s17 = scalar_lea.vmem %s3772_s11, %s3807_s18 }
 0x46f   : > { %v2925_v19 = vpop.f32.mrb[23].mxu1  ;;  %v3522_v49 = vld [vmem:[%s3519_s0] sm:$0xff]   ;;  %v3588_v61 = vld [vmem:[%s3519_s0 + $0x28] sm:$0xff]   ;;  %v3593_v62 = vld [vmem:[%s3519_s0 + $0x30] sm:$0xff]  }
 0x470   : > { %v3598_v63 = vld [vmem:[%s3519_s0 + $0x38] sm:$0xff]   ;;  %v3606_v4 = vld [vmem:[%s784_s17] ss:$0 sm:$0xff] }
 0x474   : > { %v1438_v21 = vpop.f32.mrb[24].mxu1 }
 0x475   : > { %1445 = vrot.lane.b32.xlu0 %v1438_v21, %s3785_s30  ;;  %v2936_v22 = vpop.f32.mrb[25].mxu1  ;;  %s772_s30 = scalar_lea.vmem %s3769_s8, %s3807_s18 }
 0x476   : > { %v1441_v23 = vpop.f32.mrb[26].mxu1  ;;  %v3497_v35 = vld [vmem:[%s772_s30] ss:$0 sm:$0xff]  ;;  %s3797_s30 = smov 72  }
 0x477   : > { %v2937_v24 = vpop.f32.mrb[27].mxu1 }
 0x4d7   : > { %v1210_v26 = vpop.permute.xlu0 %1209 }
 0x4d8   : > { %1213 = vst.msk [vmem:[#allocation2] sm:$0xff] %vm1212_vm4, %v1210_v26 }
 0x4df   : > { %v1328_v31 = vpop.permute.xlu1 %1327 }
 0x4e0   : > { %1331 = vst.msk [vmem:[#allocation2] sm:$0xff] %vm1330_vm5, %v1328_v31 }
 0x4e7   : > { %v1446_v32 = vpop.permute.xlu0 %1445 }
 0x4e8   : > { %1449 = vst.msk [vmem:[#allocation2] sm:$0xff] %vm1448_vm6, %v1446_v32 }
 0x4ef   : > { %v1450_v33 = vld [vmem:[#allocation2] sm:$0xff] }
 0x4f0   : > { %v1451_v34 = vpack.c.bf16 %v1450_v33, %v1450_v33 }
 0x4f2   : > { %2943 = vmatmul.mubr.msk.bf16.vlgmr.msra.gmra.mrb[12].mxu0 %vm870_vm1, %v1451_v34 }
 0x4f3   : > { %2970 = vmatprep.mubr.msk.bf16.mxu0 %vm3195_vm0, %v3194_v0  ;;  %2955 = vmatpush3.bf16.msra.mxu0 %v3522_v49 }
 0x4f4   : > { %2956 = vmatprep.subr.bf16.mxu0 %v3194_v0 }
 0x5c5   : > { %v1507_v36 = vpop.f32.mrb[12].mxu0 }
 0x5c6   : > { %v1508_v37 = vadd.f32 %v3497_v35, %v1507_v36  ;;  %v2944_v38 = vpop.f32.mrb[13].mxu0 }
 0x5c7   : > { %v1510_v39 = vpop.f32.mrb[14].mxu0 }
 0x5c8   : > { %v2945_v40 = vpop.f32.mrb[15].mxu0  ;;  %v1513_v41 = vadd.f32 %v1508_v37, %v3335_v3  ;;  %v3510_v3 = vld [vmem:[%s781_s27 + $0x8] sm:$0xff]   ;;  %s776_s27 = scalar_lea.vmem %s3770_s9, %s3395_s26  ;;  %s3794_s26 = smov 104  }
 0x5c9   : > { %2949 = vmatpush3.bf16.msra.mxu1 %v3510_v3  ;;  %v845_v20 = vld [vmem:[%s776_s27] sm:$0x3]  ;;  %s3799_s27 = smov 8  }
 0x5ca   : > { %v1514_v42 = vsel %vm870_vm1, %v1513_v41, 0.0  ;;  %2974 = vmatprep.subr.bf16.mxu1 %v3194_v0  ;;  %v3532_v53 = vrot.slane %v845_v20, %v1530_v27  ;;  %v3536_v55 = vrot.slane %v845_v20, %v1535_v28  ;;  %v3583_v28 = vld [vmem:[%s3519_s0 + $0x20] sm:$0xff]  }
 0x5cb   : > { %1515 = vadd.xlane.f32.xlu1 %v1514_v42 }
 0x658   : > { %v1516_v43 = vpop.xlane.xlu1 %1515 }
 0x659   : > { %v1518_v44 = vmul.f32 0.03125, %v1516_v43 }
 0x65b   : > { %v1519_v45 = vsub.f32 %v1513_v41, %v1518_v44 }
 0x65d   : > { %v1520_v46 = vmul.f32 %v1519_v45, %v1519_v45 }
 0x65f   : > { %v1521_v47 = vsel %vm870_vm1, %v1520_v46, 0.0 }
 0x660   : > { %1522 = vadd.xlane.f32.xlu0 %v1521_v47 }
 0x6ed   : > { %v1523_v50 = vpop.xlane.xlu0 %1522 }
 0x6ee   : > { %v1524_v51 = vmul.f32 0.03125, %v1523_v50 }
 0x6f0   : > { %v1525_v52 = vadd.f32 1e-12, %v1524_v51 }
 0x6f2   : > { %3142 = vrsqrt.f32 %v1525_v52 }
 0x6fc   : > { %v3143_v54 = vpop.eup %3142 }
 0x6fd   : > { %v1527_v56 = vmul.f32 %v3143_v54, %v1519_v45 }
 0x6ff   : > { %v1532_v57 = vmul.f32 %v3532_v53, %v1527_v56 }
 0x701   : > { %v3540_v58 = vadd.f32 %v3536_v55, %v1532_v57  ;;  %v2779_v57 = vld [vmem:[%s3432_s29 + $0x1] ss:$0 sm:$0xff]  ;;  %s3795_s29 = smov 88  }
 0x703   : > { %v1538_v59 = vpack.c.bf16 %v3540_v58, %v3540_v58 }
 0x705   : > { %2951 = vmatmul.mubr.msk.bf16.vlgmr.msra.gmra.mrb[28].mxu1 %vm870_vm1, %v1538_v59 }
 0x706   : > { %2975 = vmatpush3.bf16.msra.mxu1 %v3325_v1  ;;  %2978 = vmatprep.mubr.msk.bf16.mxu1 %vm3195_vm0, %v3194_v0  ;;  %v2774_v1 = vld [vmem:[%s3348_s24 + $0x8] sm:$0xff]  ;;  %s3801_s24 = smov 24  }
 0x707   : > { %2976 = vmatprep.subr.bf16.mxu1 %v3194_v0  ;;  %v1733_v27 = vpack.c.bf16 %v2774_v1, %v2774_v1 }
 0x70a   : > { %2977 = vmatpush3.bf16.msra.mxu1 %v3332_v2  ;;  %v3568_v2 = vld [vmem:[%s3519_s0 + $0x8] sm:$0xff]  }
 0x70b   : > { %2982 = vmatprep.subr.bf16.mxu1 %v3194_v0  ;;  %2957 = vmatpush3.bf16.msra.mxu0 %v3568_v2 }
 0x70c   : > { %2958 = vmatprep.subr.bf16.mxu0 %v3194_v0 }
 0x70d   : > { %2979 = vmatmul.mubr.msk.bf16.vlgmr.msra.gmra.mrb[32].mxu1 %vm870_vm1, %v1736_v25 }
 0x70e   : > { %2983 = vmatpush3.bf16.msra.mxu1 %v3341_v5  ;;  %2986 = vmatprep.mubr.msk.bf16.mxu1 %vm3195_vm0, %v3194_v0  ;;  %v3573_v5 = vld [vmem:[%s3519_s0 + $0x10] sm:$0xff]  }
 0x70f   : > { %2984 = vmatprep.subr.bf16.mxu1 %v3194_v0  ;;  %2959 = vmatpush3.bf16.msra.mxu0 %v3573_v5 }
 0x710   : > { %2960 = vmatprep.subr.bf16.mxu0 %v3194_v0 }
 0x712   : > { %2985 = vmatpush3.bf16.msra.mxu1 %v3352_v6  ;;  %v3578_v6 = vld [vmem:[%s3519_s0 + $0x18] sm:$0xff]   ;;  %s3792_s0 = smov 120  }
 0x713   : > { %2990 = vmatprep.subr.bf16.mxu1 %v3194_v0  ;;  %2961 = vmatpush3.bf16.msra.mxu0 %v3578_v6 }
 0x714   : > { %2962 = vmatprep.subr.bf16.mxu0 %v3194_v0 }
 0x715   : > { %2987 = vmatmul.mubr.msk.bf16.vlgmr.msra.gmra.mrb[36].mxu1 %vm870_vm1, %v1733_v27 }
 0x716   : > { %2992 = vmatprep.mubr.msk.bf16.mxu1 %vm3195_vm0, %v3194_v0 }
 0x717   : > { %2963 = vmatpush3.bf16.msra.mxu0 %v3583_v28 }
 0x718   : > { %2964 = vmatprep.subr.bf16.mxu0 %v3194_v0 }
 0x71b   : > { %2965 = vmatpush3.bf16.msra.mxu0 %v3588_v61 }
 0x71c   : > { %2966 = vmatprep.subr.bf16.mxu0 %v3194_v0 }
 0x71f   : > { %2967 = vmatpush3.bf16.msra.mxu0 %v3593_v62 }
 0x720   : > { %2968 = vmatprep.subr.bf16.mxu0 %v3194_v0 }
 0x723   : > { %2969 = vmatpush3.bf16.msra.mxu0 %v3598_v63 }
 0x724   : > { %3002 = vmatprep.subr.bf16.mxu0 %v3194_v0 }
 0x7d8   : > { %v1594_v7 = vpop.f32.mrb[28].mxu1 }
 0x7d9   : > { %v1595_v8 = vadd.f32 %v3606_v4, %v1594_v7  ;;  %v2952_v9 = vpop.f32.mrb[29].mxu1 }
 0x7da   : > { %v1597_v10 = vpop.f32.mrb[30].mxu1 }
 0x7db   : > { %v1601_v11 = vmul.f32 0.044715, %v1595_v8  ;;  %v2953_v16 = vpop.f32.mrb[31].mxu1  ;;  %v1600_v41 = vmul.f32 0.5, %v1595_v8 }
 0x7dd   : > { %v1602_v17 = vmul.f32 %v1601_v11, %v1595_v8 }
 0x7df   : > { %v1603_v18 = vmul.f32 %v1602_v17, %v1595_v8 }
 0x7e0   : > { %v1774_v19 = vpop.f32.mrb[32].mxu1 }
 0x7e1   : > { %v1604_v21 = vadd.f32 %v1603_v18, %v1595_v8  ;;  %v1775_v22 = vadd.f32 %v3373_v14, %v1774_v19  ;;  %v2980_v23 = vpop.f32.mrb[33].mxu1 }
 0x7e2   : > { %v1777_v24 = vpop.f32.mrb[34].mxu1 }
 0x7e3   : > { %v1823_v26 = vpack.c.bf16 %v1775_v22, %v1775_v22  ;;  %v2981_v31 = vpop.f32.mrb[35].mxu1  ;;  %v1605_v32 = vmul.f32 0.7978846, %v1604_v21 }
 0x7e5   : > { %1942 = vrot.lane.b32.xlu1 %v1823_v26, %s3792_s0  ;;  %3144 = vtanh.f32 %v1605_v32 }
 0x7e8   : > { %v1817_v33 = vpop.f32.mrb[36].mxu1 }
 0x7e9   : > { %v1818_v34 = vadd.f32 %v3371_v13, %v1817_v33  ;;  %v2988_v36 = vpop.f32.mrb[37].mxu1 }
 0x7ea   : > { %v1820_v37 = vpop.f32.mrb[38].mxu1 }
 0x7eb   : > { %v3612_v38 = vpack.c.bf16 %v1818_v34, %v1818_v34  ;;  %v2989_v39 = vpop.f32.mrb[39].mxu1 }
 0x7ed   : > { %2061 = vrot.lane.b32.xlu1 %v3612_v38, %s3793_s23  ;;  %1944 = vrot.lane.b32.xlu0 %v3612_v38, %s3792_s0  ;;  %v1829_v14 = vsel %vm977_vm2, %v3612_v38, 0 }
 0x7ee   : > { %2991 = vmatpush3.bf16.xpose.msra.mxu1 %v1829_v14 }
 0x7ef   : > { %v3145_v40 = vpop.eup %3144  ;;  %2996 = vmatprep.subr.bf16.mxu1 %v3194_v0 }
 0x7f0   : > { %v1607_v13 = vadd.f32 1.0, %v3145_v40 }
 0x7f1   : > { %2178 = vrot.lane.b32.xlu1 %v3612_v38, %s3794_s26  ;;  %2059 = vrot.lane.b32.xlu0 %v1823_v26, %s3793_s23  ;;  %s792_s23 = scalar_lea.vmem %s3774_s13, %s3807_s18 }
 0x7f2   : > { %v1608_v42 = vmul.f32 %v1607_v13, %v1600_v41 }
 0x7f4   : > { %v1609_v43 = vpack.c.bf16 %v1608_v42, %v1608_v42 }
 0x7f5   : > { %2176 = vrot.lane.b32.xlu0 %v1823_v26, %s3794_s26  ;;  %2993 = vmatmul.mubr.msk.bf16.vlgmr.msra.gmra.mrb[40].mxu1 %vm977_vm2, %v1823_v26 }
 0x7f6   : > { %2971 = vmatmul.mubr.bf16.vlgmr.msra.gmra.mrb[16].mxu0 %v1609_v43  ;;  %2998 = vmatprep.mubr.msk.bf16.mxu1 %vm3195_vm0, %v3194_v0 }
 0x7f7   : > { %3004 = vmatprep.mubr.msk.bf16.mxu0 %vm3195_vm0, %v3194_v0 }
 0x857   : > { %v1943_v46 = vpop.permute.xlu1 %1942 }
 0x85f   : > { %v1945_v44 = vpop.permute.xlu0 %1944  ;;  %v2062_v47 = vpop.permute.xlu1 %2061 }
 0x860   : > { %v1950_v45 = vsel %vm977_vm2, %v1945_v44, 0  ;;  %v2067_v50 = vsel %vm977_vm2, %v2062_v47, 0 }
 0x861   : > { %3003 = vmatpush3.bf16.xpose.msra.mxu0 %v1950_v45 }
 0x862   : > { %3014 = vmatprep.subr.bf16.mxu0 %v3194_v0 }
 0x863   : > { %v2179_v51 = vpop.permute.xlu1 %2178  ;;  %v2060_v52 = vpop.permute.xlu0 %2059 }
 0x864   : > { %v2184_v20 = vsel %vm977_vm2, %v2179_v51, 0 }
 0x867   : > { %v2177_v54 = vpop.permute.xlu0 %2176 }
 0x868   : > { %3005 = vmatmul.mubr.msk.bf16.vlgmr.msra.gmra.mrb[20].mxu0 %vm977_vm2, %v1943_v46 }
 0x869   : > { %3015 = vmatpush3.bf16.xpose.msra.mxu0 %v2067_v50  ;;  %3016 = vmatprep.mubr.msk.bf16.mxu0 %vm3195_vm0, %v3194_v0 }
 0x86a   : > { %3026 = vmatprep.subr.bf16.mxu0 %v3194_v0 }
 0x870   : > { %3017 = vmatmul.mubr.msk.bf16.vlgmr.msra.gmra.mrb[24].mxu0 %vm977_vm2, %v2060_v52 }
 0x871   : > { %3027 = vmatpush3.bf16.xpose.msra.mxu0 %v2184_v20  ;;  %3028 = vmatprep.mubr.msk.bf16.mxu0 %vm3195_vm0, %v3194_v0 }
 0x872   : > { %3038 = vmatprep.subr.bf16.mxu0 %v3194_v0 }
 0x878   : > { %3029 = vmatmul.mubr.msk.bf16.vlgmr.msra.gmra.mrb[28].mxu0 %vm977_vm2, %v2177_v54 }
 0x879   : > { %3039 = vmatpush3.bf16.msra.mxu0 %v3477_v12  ;;  %3042 = vmatprep.mubr.msk.bf16.mxu0 %vm3195_vm0, %v3194_v0 }
 0x87a   : > { %3040 = vmatprep.subr.bf16.mxu0 %v3194_v0 }
 0x87d   : > { %3041 = vmatpush3.bf16.msra.mxu0 %v3480_v15 }
 0x87e   : > { %3054 = vmatprep.subr.bf16.mxu0 %v3194_v0 }
 0x8c8   : > { %v1865_v56 = vpop.f32.mrb[40].mxu1 }
 0x8c9   : > { %v1871_v59 = vmul.f32 0.35355338, %v1865_v56  ;;  %v3650_v25 = vpop.f32.mrb[16].mxu0  ;;  %v2994_v1 = vpop.f32.mrb[41].mxu1 }
 0x8ca   : > { %v2972_v27 = vpop.f32.mrb[17].mxu0  ;;  %v1868_v7 = vpop.f32.mrb[42].mxu1 }
 0x8cb   : > { %v1701_v8 = vpop.f32.mrb[18].mxu0  ;;  %v2995_v9 = vpop.f32.mrb[43].mxu1  ;;  %v1878_v12 = vadd.f32 %v2779_v57, %v1871_v59 }
 0x8cc   : > { %v2973_v10 = vpop.f32.mrb[19].mxu0 }
 0x8cd   : > { %v1879_v11 = vsel %vm977_vm2, %v1878_v12, -inf }
 0x8ce   : > { %1880 = vmax.xlane.f32.xlu1 %v1879_v11 }
 0x93b   : > { %v1986_v16 = vpop.f32.mrb[20].mxu0 }
 0x93c   : > { %v1992_v17 = vmul.f32 0.35355338, %v1986_v16  ;;  %v3006_v15 = vpop.f32.mrb[21].mxu0 }
 0x93d   : > { %v1989_v18 = vpop.f32.mrb[22].mxu0 }
 0x93e   : > { %v3007_v19 = vpop.f32.mrb[23].mxu0  ;;  %v1993_v21 = vadd.f32 %v2779_v57, %v1992_v17 }
 0x940   : > { %v1994_v22 = vsel %vm977_vm2, %v1993_v21, -inf }
 0x941   : > { %1995 = vmax.xlane.f32.xlu0 %v1994_v22 }
 0x943   : > { %v2103_v23 = vpop.f32.mrb[24].mxu0 }
 0x944   : > { %v2109_v24 = vmul.f32 0.35355338, %v2103_v23  ;;  %v3018_v26 = vpop.f32.mrb[25].mxu0 }
 0x945   : > { %v2106_v31 = vpop.f32.mrb[26].mxu0 }
 0x946   : > { %v3019_v32 = vpop.f32.mrb[27].mxu0  ;;  %v2110_v33 = vadd.f32 %v2779_v57, %v2109_v24 }
 0x948   : > { %v2111_v34 = vsel %vm977_vm2, %v2110_v33, -inf }
 0x949   : > { %2112 = vmax.xlane.f32.xlu0 %v2111_v34 }
 0x94b   : > { %v2220_v36 = vpop.f32.mrb[28].mxu0 }
 0x94c   : > { %v2226_v37 = vmul.f32 0.35355338, %v2220_v36  ;;  %v3030_v39 = vpop.f32.mrb[29].mxu0 }
 0x94d   : > { %v2223_v14 = vpop.f32.mrb[30].mxu0 }
 0x94e   : > { %v3031_v40 = vpop.f32.mrb[31].mxu0  ;;  %v2227_v41 = vadd.f32 %v2779_v57, %v2226_v37 }
 0x950   : > { %v2228_v13 = vsel %vm977_vm2, %v2227_v41, -inf }
 0x951   : > { %2229 = vmax.xlane.f32.xlu1 %v2228_v13 }
 0x95b   : > { %v1881_v42 = vpop.xlane.xlu1 %1880 }
 0x95c   : > { %v1882_v43 = vsub.f32 %v1878_v12, %v1881_v42 }
 0x95e   : > { %v1883_v44 = vmul.f32 1.442695, %v1882_v43 }
 0x960   : > { %3146 = vpow2.f32 %v1883_v44 }
 0x96a   : > { %v3147_v45 = vpop.eup %3146 }
 0x96b   : > { %v1885_v46 = vsel %vm977_vm2, %v3147_v45, 0.0 }
 0x96c   : > { %1886 = vadd.xlane.f32.xlu0 %v1885_v46 }
 0x9ce   : > { %v1996_v47 = vpop.xlane.xlu0 %1995 }
 0x9cf   : > { %v1997_v50 = vsub.f32 %v1993_v21, %v1996_v47 }
 0x9d1   : > { %v1998_v51 = vmul.f32 1.442695, %v1997_v50 }
 0x9d3   : > { %3148 = vpow2.f32 %v1998_v51 }
 0x9d6   : > { %v2113_v52 = vpop.xlane.xlu0 %2112 }
 0x9d7   : > { %v2114_v20 = vsub.f32 %v2110_v33, %v2113_v52 }
 0x9d9   : > { %v2115_v54 = vmul.f32 1.442695, %v2114_v20 }
 0x9db   : > { %3150 = vpow2.f32 %v2115_v54 }
 0x9dd   : > { %v3149_v56 = vpop.eup %3148 }
 0x9de   : > { %v2000_v57 = vsel %vm977_vm2, %v3149_v56, 0.0  ;;  %v2230_v27 = vpop.xlane.xlu1 %2229 }
 0x9df   : > { %2001 = vadd.xlane.f32.xlu1 %v2000_v57  ;;  %v2231_v7 = vsub.f32 %v2227_v41, %v2230_v27 }
 0x9e1   : > { %v2232_v8 = vmul.f32 1.442695, %v2231_v7 }
 0x9e3   : > { %3152 = vpow2.f32 %v2232_v8 }
 0x9e5   : > { %v3151_v59 = vpop.eup %3150 }
 0x9e6   : > { %v2117_v1 = vsel %vm977_vm2, %v3151_v59, 0.0 }
 0x9e7   : > { %2118 = vadd.xlane.f32.xlu0 %v2117_v1 }
 0x9ed   : > { %v3153_v9 = vpop.eup %3152 }
 0x9ee   : > { %v2234_v12 = vsel %vm977_vm2, %v3153_v9, 0.0 }
 0x9f0   : > { %2006 = vrot.lane.b32.xlu1 %v3612_v38, %s3795_s29  ;;  %s3738_s29 = scalar_lea.vmem %s3776_s15, %s3313_s22 }
 0x9f9   : > { %v1887_v10 = vpop.xlane.xlu0 %1886 }
 0x9fa   : > { %3154 = vrcp.f32 %v1887_v10 }
 0x9fd   : > { %1892 = vrot.lane.b32.xlu0 %v3612_v38, %s3796_s16 }
 0xa01   : > { %2240 = vrot.lane.b32.xlu0 %v3612_v38, %s3797_s30 }
 0xa04   : > { %v3155_v16 = vpop.eup %3154 }
 0xa05   : > { %v1889_v15 = vmul.f32 %v3155_v16, %v3147_v45 }
 0xa07   : > { %v1890_v22 = vpack.c.bf16 %v1889_v15, %v1889_v15 }
 0xa14   : > { %2235 = vadd.xlane.f32.xlu1 %v2234_v12 }
 0xa25   : > { %2123 = vrot.lane.b32.xlu1 %v3612_v38, %s3798_s25 }
 0xa6c   : > { %v2002_v11 = vpop.xlane.xlu1 %2001 }
 0xa6d   : > { %3156 = vrcp.f32 %v2002_v11 }
 0xa70   : > { %v2007_v21 = vpop.permute.xlu1 %2006 }
 0xa71   : > { %v2012_v24 = vsel %vm1050_vm3, %v2007_v21, 0 }
 0xa74   : > { %v2119_v17 = vpop.xlane.xlu0 %2118 }
 0xa75   : > { %3158 = vrcp.f32 %v2119_v17 }
 0xa77   : > { %v3157_v23 = vpop.eup %3156 }
 0xa78   : > { %v1893_v18 = vpop.permute.xlu0 %1892  ;;  %v2004_v38 = vmul.f32 %v3157_v23, %v3149_v56 }
 0xa79   : > { %v1898_v19 = vsel %vm1050_vm3, %v1893_v18, 0 }
 0xa7a   : > { %2997 = vmatpush3.bf16.msra.mxu1 %v1898_v19  ;;  %v2005_v26 = vpack.c.bf16 %v2004_v38, %v2004_v38 }
 0xa7b   : > { %3008 = vmatprep.subr.bf16.mxu1 %v3194_v0 }
 0xa7c   : > { %v2241_v37 = vpop.permute.xlu0 %2240 }
 0xa7d   : > { %2999 = vmatmul.mubr.msk.bf16.vlgmr.msra.gmra.mrb[44].mxu1 %vm977_vm2, %v1890_v22  ;;  %v2246_v14 = vsel %vm1050_vm3, %v2241_v37, 0 }
 0xa7e   : > { %3009 = vmatpush3.bf16.msra.mxu1 %v2012_v24  ;;  %3010 = vmatprep.mubr.msk.bf16.mxu1 %vm3195_vm0, %v3194_v0 }
 0xa7f   : > { %3020 = vmatprep.subr.bf16.mxu1 %v3194_v0  ;;  %v3159_v31 = vpop.eup %3158 }
 0xa80   : > { %v2121_v33 = vmul.f32 %v3159_v31, %v3151_v59 }
 0xa82   : > { %v2122_v39 = vpack.c.bf16 %v2121_v33, %v2121_v33 }
 0xa85   : > { %3011 = vmatmul.mubr.msk.bf16.vlgmr.msra.gmra.mrb[48].mxu1 %vm977_vm2, %v2005_v26 }
 0xa86   : > { %3022 = vmatprep.mubr.msk.bf16.mxu1 %vm3195_vm0, %v3194_v0 }
 0xaa1   : > { %v2236_v32 = vpop.xlane.xlu1 %2235 }
 0xaa2   : > { %3160 = vrcp.f32 %v2236_v32 }
 0xaa5   : > { %v2124_v34 = vpop.permute.xlu1 %2123 }
 0xaa6   : > { %v2129_v36 = vsel %vm1050_vm3, %v2124_v34, 0 }
 0xaa7   : > { %3021 = vmatpush3.bf16.msra.mxu1 %v2129_v36 }
 0xaa8   : > { %3032 = vmatprep.subr.bf16.mxu1 %v3194_v0 }
 0xaaa   : > { %3023 = vmatmul.mubr.msk.bf16.vlgmr.msra.gmra.mrb[52].mxu1 %vm977_vm2, %v2122_v39 }
 0xaab   : > { %3033 = vmatpush3.bf16.msra.mxu1 %v2246_v14  ;;  %3034 = vmatprep.mubr.msk.bf16.mxu1 %vm3195_vm0, %v3194_v0 }
 0xaac   : > { %v3161_v40 = vpop.eup %3160  ;;  %3046 = vmatprep.subr.bf16.mxu1 %v3194_v0 }
 0xaad   : > { %v2238_v41 = vmul.f32 %v3161_v40, %v3153_v9 }
 0xaaf   : > { %v2239_v13 = vpack.c.bf16 %v2238_v41, %v2238_v41 }
 0xab2   : > { %3035 = vmatmul.mubr.msk.bf16.vlgmr.msra.gmra.mrb[56].mxu1 %vm977_vm2, %v2239_v13 }
 0xab3   : > { %3047 = vmatpush3.bf16.msra.mxu1 %v3507_v48  ;;  %3050 = vmatprep.mubr.msk.bf16.mxu1 %vm3195_vm0, %v3194_v0 }
 0xab4   : > { %3048 = vmatprep.subr.bf16.mxu1 %v3194_v0 }
 0xab7   : > { %3049 = vmatpush3.bf16.msra.mxu1 %v3510_v3 }
 0xb50   : > { %v1934_v42 = vpop.f32.mrb[44].mxu1 }
 0xb51   : > { %1940 = vst.msk [vmem:[#allocation2] sm:$0xff] %vm977_vm2, %v1934_v42  ;;  %v3000_v43 = vpop.f32.mrb[45].mxu1 }
 0xb52   : > { %v1937_v44 = vpop.f32.mrb[46].mxu1 }
 0xb53   : > { %v3001_v45 = vpop.f32.mrb[47].mxu1 }
 0xb58   : > { %v2048_v46 = vpop.f32.mrb[48].mxu1 }
 0xb59   : > { %2055 = vrot.lane.b32.xlu1 %v2048_v46, %s3799_s27  ;;  %v3012_v47 = vpop.f32.mrb[49].mxu1 }
 0xb5a   : > { %v2051_v50 = vpop.f32.mrb[50].mxu1 }
 0xb5b   : > { %v3013_v51 = vpop.f32.mrb[51].mxu1 }
 0xb7d   : > { %v2165_v48 = vpop.f32.mrb[52].mxu1 }
 0xb7e   : > { %2172 = vrot.lane.b32.xlu0 %v2165_v48, %s3800_s28  ;;  %v3024_v52 = vpop.f32.mrb[53].mxu1 }
 0xb7f   : > { %v2168_v20 = vpop.f32.mrb[54].mxu1 }
 0xb80   : > { %v3025_v54 = vpop.f32.mrb[55].mxu1 }
 0xb85   : > { %v2282_v56 = vpop.f32.mrb[56].mxu1 }
 0xb86   : > { %2289 = vrot.lane.b32.xlu1 %v2282_v56, %s3801_s24  ;;  %v3036_v3 = vpop.f32.mrb[57].mxu1 }
 0xb87   : > { %v2285_v57 = vpop.f32.mrb[58].mxu1 }
 0xb88   : > { %v3037_v59 = vpop.f32.mrb[59].mxu1 }
 0xbcb   : > { %v2056_v1 = vpop.permute.xlu1 %2055 }
 0xbcc   : > { %2058 = vst.msk [vmem:[#allocation2] sm:$0xff] %vm1212_vm4, %v2056_v1 }
 0xbf0   : > { %v2173_v27 = vpop.permute.xlu0 %2172 }
 0xbf1   : > { %2175 = vst.msk [vmem:[#allocation2] sm:$0xff] %vm1330_vm5, %v2173_v27 }
 0xbf8   : > { %v2290_v7 = vpop.permute.xlu1 %2289 }
 0xbf9   : > { %2292 = vst.msk [vmem:[#allocation2] sm:$0xff] %vm1448_vm6, %v2290_v7 }
 0xc00   : > { %v2293_v8 = vld [vmem:[#allocation2] sm:$0xff] }
 0xc01   : > { %v2294_v9 = vpack.c.bf16 %v2293_v8, %v2293_v8 }
 0xc03   : > { %3043 = vmatmul.mubr.msk.bf16.vlgmr.msra.gmra.mrb[32].mxu0 %vm870_vm1, %v2294_v9 }
 0xc04   : > { %3055 = vmatpush3.bf16.msra.mxu0 %v3522_v49  ;;  %3070 = vmatprep.mubr.msk.bf16.mxu0 %vm3195_vm0, %v3194_v0  ;;  %v3720_v49 = vld [vmem:[%s792_s23] ss:$0 sm:$0xff] }
 0xc05   : > { %3056 = vmatprep.subr.bf16.mxu0 %v3194_v0 }
 0xc08   : > { %3057 = vmatpush3.bf16.msra.mxu0 %v3568_v2 }
 0xc09   : > { %3058 = vmatprep.subr.bf16.mxu0 %v3194_v0 }
 0xc0c   : > { %3059 = vmatpush3.bf16.msra.mxu0 %v3573_v5  ;;  %v1699_v5 = vadd.f32 %v3720_v49, %v3650_v25 }
 0xc0d   : > { %3060 = vmatprep.subr.bf16.mxu0 %v3194_v0 }
 0xc10   : > { %3061 = vmatpush3.bf16.msra.mxu0 %v3578_v6 }
 0xc11   : > { %3062 = vmatprep.subr.bf16.mxu0 %v3194_v0 }
 0xc14   : > { %3063 = vmatpush3.bf16.msra.mxu0 %v3583_v28 }
 0xc15   : > { %3064 = vmatprep.subr.bf16.mxu0 %v3194_v0 }
 0xc18   : > { %3065 = vmatpush3.bf16.msra.mxu0 %v3588_v61 }
 0xc19   : > { %3066 = vmatprep.subr.bf16.mxu0 %v3194_v0 }
 0xc1c   : > { %3067 = vmatpush3.bf16.msra.mxu0 %v3593_v62 }
 0xc1d   : > { %3068 = vmatprep.subr.bf16.mxu0 %v3194_v0 }
 0xc20   : > { %3069 = vmatpush3.bf16.msra.mxu0 %v3598_v63  ;;  %v1704_v63 = vadd.f32 %v1699_v5, %v3540_v58 }
 0xc22   : > { %v1705_v10 = vsel %vm870_vm1, %v1704_v63, 0.0 }
 0xcd6   : > { %v2332_v2 = vpop.f32.mrb[32].mxu0 }
 0xcd7   : > { %v2333_v6 = vadd.f32 %v3497_v35, %v2332_v2  ;;  %v3044_v28 = vpop.f32.mrb[33].mxu0 }
 0xcd8   : > { %v2335_v61 = vpop.f32.mrb[34].mxu0 }
 0xcd9   : > { %v3045_v12 = vpop.f32.mrb[35].mxu0  ;;  %v2338_v62 = vadd.f32 %v3546_v60, %v2333_v6 }
 0xcdb   : > { %v2339_v0 = vsel %vm870_vm1, %v2338_v62, 0.0 }
 0xcdc   : > { %2340 = vadd.xlane.f32.xlu0 %v2339_v0 }
 0xce0   : > { %1706 = vadd.xlane.f32.xlu0 %v1705_v10 }
 0xd69   : > { %v2341_v11 = vpop.xlane.xlu0 %2340 }
 0xd6a   : > { %v2342_v16 = vmul.f32 0.03125, %v2341_v11 }
 0xd6c   : > { %v2343_v17 = vsub.f32 %v2338_v62, %v2342_v16 }
 0xd6d   : > { %v1707_v15 = vpop.xlane.xlu0 %1706 }
 0xd6e   : > { %v1708_v25 = vmul.f32 0.03125, %v1707_v15  ;;  %v2344_v18 = vmul.f32 %v2343_v17, %v2343_v17 }
 0xd70   : > { %v1709_v35 = vsub.f32 %v1704_v63, %v1708_v25  ;;  %v2345_v19 = vsel %vm870_vm1, %v2344_v18, 0.0 }
 0xd71   : > { %2346 = vadd.xlane.f32.xlu1 %v2345_v19 }
 0xd72   : > { %v1710_v21 = vmul.f32 %v1709_v35, %v1709_v35 }
 0xd74   : > { %v1711_v60 = vsel %vm870_vm1, %v1710_v21, 0.0 }
 0xd75   : > { %1712 = vadd.xlane.f32.xlu1 %v1711_v60 }
 0xdfe   : > { %v2347_v22 = vpop.xlane.xlu1 %2346 }
 0xdff   : > { %v2348_v58 = vmul.f32 0.03125, %v2347_v22 }
 0xe01   : > { %v2349_v23 = vadd.f32 1e-12, %v2348_v58 }
 0xe02   : > { %v1713_v24 = vpop.xlane.xlu1 %1712 }
 0xe03   : > { %3162 = vrsqrt.f32 %v2349_v23  ;;  %v1714_v38 = vmul.f32 0.03125, %v1713_v24 }
 0xe05   : > { %v1715_v26 = vadd.f32 1e-12, %v1714_v38 }
 0xe07   : > { %3164 = vrsqrt.f32 %v1715_v26 }
 0xe0d   : > { %v3163_v31 = vpop.eup %3162 }
 0xe0e   : > { %v2351_v32 = vmul.f32 %v3163_v31, %v2343_v17 }
 0xe10   : > { %v2352_v33 = vmul.f32 %v2351_v32, %v3532_v53 }
 0xe11   : > { %v3165_v34 = vpop.eup %3164 }
 0xe12   : > { %v1717_v36 = vmul.f32 %v3165_v34, %v1709_v35  ;;  %v2353_v37 = vadd.f32 %v2352_v33, %v3536_v55 }
 0xe14   : > { %v1722_v39 = vmul.f32 %v3407_v29, %v1717_v36  ;;  %v2354_v14 = vpack.c.bf16 %v2353_v37, %v2353_v37 }
 0xe16   : > { %v1727_v40 = vadd.f32 %v3411_v30, %v1722_v39  ;;  %3051 = vmatmul.mubr.msk.bf16.vlgmr.msra.gmra.mrb[60].mxu1 %vm870_vm1, %v2354_v14 }
 0xe18   : > { %1728 = vst.msk [vmem:[%s3738_s29] sm:$0xff] %vm870_vm1, %v1727_v40 }
 0xee9   : > { %v2392_v53 = vpop.f32.mrb[60].mxu1 }
 0xeea   : > { %v2393_v41 = vadd.f32 %v3606_v4, %v2392_v53  ;;  %v3052_v13 = vpop.f32.mrb[61].mxu1 }
 0xeeb   : > { %v2395_v55 = vpop.f32.mrb[62].mxu1 }
 0xeec   : > { %v2399_v42 = vmul.f32 0.044715, %v2393_v41  ;;  %v3053_v43 = vpop.f32.mrb[63].mxu1  ;;  %v2398_v51 = vmul.f32 0.5, %v2393_v41 }
 0xeee   : > { %v2400_v44 = vmul.f32 %v2399_v42, %v2393_v41 }
 0xef0   : > { %v2401_v45 = vmul.f32 %v2400_v44, %v2393_v41 }
 0xef2   : > { %v2402_v46 = vadd.f32 %v2401_v45, %v2393_v41 }
 0xef4   : > { %v2403_v47 = vmul.f32 0.7978846, %v2402_v46 }
 0xef6   : > { %3166 = vtanh.f32 %v2403_v47 }
 0xf00   : > { %v3167_v50 = vpop.eup %3166 }
 0xf01   : > { %v2405_v48 = vadd.f32 1.0, %v3167_v50 }
 0xf03   : > { %v2406_v52 = vmul.f32 %v2405_v48, %v2398_v51 }
 0xf05   : > { %v2407_v20 = vpack.c.bf16 %v2406_v52, %v2406_v52 }
 0xf07   : > { %3071 = vmatmul.mubr.bf16.vlgmr.msra.gmra.mrb[36].mxu0 %v2407_v20 }
 0xfda   : > { %v2442_v54 = vpop.f32.mrb[36].mxu0 }
 0xfdb   : > { %v2443_v56 = vadd.f32 %v3720_v49, %v2442_v54  ;;  %v3072_v3 = vpop.f32.mrb[37].mxu0 }
 0xfdc   : > { %v2445_v4 = vpop.f32.mrb[38].mxu0 }
 0xfdd   : > { %v3073_v57 = vpop.f32.mrb[39].mxu0  ;;  %v2448_v59 = vadd.f32 %v2443_v56, %v2353_v37 }
 0xfdf   : > { %v2449_v1 = vsel %vm870_vm1, %v2448_v59, 0.0 }
 0xfe0   : > { %2450 = vadd.xlane.f32.xlu0 %v2449_v1 }
0x106d   : > { %v2451_v27 = vpop.xlane.xlu0 %2450 }
0x106e   : > { %v2452_v7 = vmul.f32 0.03125, %v2451_v27 }
0x1070   : > { %v2453_v8 = vsub.f32 %v2448_v59, %v2452_v7 }
0x1072   : > { %v2454_v9 = vmul.f32 %v2453_v8, %v2453_v8 }
0x1074   : > { %v2455_v2 = vsel %vm870_vm1, %v2454_v9, 0.0 }
0x1075   : > { %2456 = vadd.xlane.f32.xlu0 %v2455_v2 }
0x1102   : > { %v2457_v5 = vpop.xlane.xlu0 %2456 }
0x1103   : > { %v2458_v6 = vmul.f32 0.03125, %v2457_v5 }
0x1105   : > { %v2459_v28 = vadd.f32 1e-12, %v2458_v6 }
0x1107   : > { %3168 = vrsqrt.f32 %v2459_v28 }
0x1111   : > { %v3169_v49 = vpop.eup %3168 }
0x1112   : > { %v2461_v61 = vmul.f32 %v3169_v49, %v2453_v8 }
0x1114   : > { %v2462_v12 = vmul.f32 %v2461_v61, %v3407_v29 }
0x1116   : > { %v2463_v62 = vadd.f32 %v2462_v12, %v3411_v30 }
0x1118   : > { %2789 = vst.msk [vmem:[%s3738_s29 + $0x8] sm:$0xff] %vm870_vm1, %v2463_v62 }
0x1119 PF: > { %s25_s20 = sadd.s32 1, %s3192_s20   ;;  %s3802_s18 = smov %s3188_s19 }
0x111a   : > { %p22_p5 = scmp.ge.s32.totalorder %s25_s20, 4   ;;  %s3803_s19 = smov %s3805_s21 }
0x111c   :  { %24 = sbr.rel (!%p22_p5) target bundleno = 2 (0x2), region = 156 }

</bundles_post_ra>
